<compile_context>
chip_gen: v6e
topology: v6e:2x2x1
jax: 0.10.0
libtpu: 0.0.40
codegen_flags: <defaults>
</compile_context>

<pallas_src>
import jax
import jax.numpy as jnp
import numpy as np
from jax import lax
from jax.experimental import pallas as pl
from jax.experimental.pallas import tpu as pltpu

# ----------------------------- problem sizes -----------------------------
T, B, D = 8, 2, 32            # seq_len, batch, embed_dim
CHUNK = 8                     # args.chunk_size
N_CHUNK = D // CHUNK          # 4
H = D                         # ON-LSTM hidden == embed_dim (layer_sizes=[D, D])
G = 4 * H + 2 * N_CHUNK       # gate width of ih / hh projections (136)
FFN = 64                      # args.encoder_ffn_embed_dim
EPS = 1e-6                    # fairseq custom LayerNorm eps (added to std)


# ========================= fused single-pass kernel =========================
def fused_kernel(x_ref, wih_ref, whh_ref, bias_ref,
                 g1_ref, be1_ref, w1_ref, b1_ref, w2_ref, b2_ref,
                 g2_ref, be2_ref, out_ref):
    n = N_CHUNK

    # Folded cumsum∘expand constant: triE[i, j] = 1 iff chunk(j) >= i,
    # i.e. (s @ triE)[b, j] == cumsum(s)[b, j // CHUNK].  Built from iotas (no DMA).
    ti = lax.broadcasted_iota(jnp.int32, (n, H), 0)
    tj = lax.broadcasted_iota(jnp.int32, (n, H), 1)
    triE = (tj >= ti * CHUNK).astype(jnp.bfloat16)        # (n, H)

    x = x_ref[...]                                        # (T*B, D) f32
    wih = wih_ref[...]                                    # (D, G)   bf16
    whh = whh_ref[...]                                    # (H, G)   bf16

    # ---- hoisted input projection: one bf16 MXU pass for all timesteps ----
    # (ih and hh biases pre-summed into bias_ref host-side)
    tin = jnp.dot(x.astype(jnp.bfloat16), wih,
                  preferred_element_type=jnp.float32) + bias_ref[...]       # (T*B, G) f32

    # Hoist the per-step 2-row extraction off the recurrence's carried chain.
    tin_steps = [tin[t * B:(t + 1) * B, :] for t in range(T)]

    hx = jnp.zeros((B, H), jnp.float32)
    cx = jnp.zeros((B, H), jnp.float32)
    outs = []
    for t in range(T):                                    # fully unrolled (T=8)
        gates = tin_steps[t] + jnp.dot(hx.astype(jnp.bfloat16), whh,
                                       preferred_element_type=jnp.float32)  # (B, G)

        # gate layout (repacked host-side): [out | cell | in | f | ci | cf]
        # single EUP sigmoid over the whole 128-lane [out|cell|in|f] slab
        sig = jax.nn.sigmoid(gates[:, 0:4 * H])
        out_s = sig[:, 0:H]
        in_s = sig[:, 2 * H:3 * H]
        f_s = sig[:, 3 * H:4 * H]
        cell_t = jnp.tanh(gates[:, H:2 * H])

        chunk_g = gates[:, 4 * H:4 * H + 2 * n]           # (B, 2n), starts at lane 128
        z = jnp.concatenate([chunk_g[:, 0:n], chunk_g[:, n:2 * n]], axis=0)  # (2B, n)
        z = z - jnp.max(z, axis=-1, keepdims=True)
        e = jnp.exp(z)
        denom = jnp.sum(e, axis=-1, keepdims=True)        # XLU reduce overlaps MXU push
        cs_full = jnp.dot(e.astype(jnp.bfloat16), triE,
                          preferred_element_type=jnp.float32)                # (2B, H)
        cs_full = cs_full * pl.reciprocal(denom, approx=True)                # normalize after
        ci_f = 1.0 - cs_full[0:B, :]
        cf_f = cs_full[B:2 * B, :]
        ov_f = ci_f * cf_f                                # exact: expand is one-hot per col

        f = f_s * ov_f + (cf_f - ov_f)
        i = in_s * ov_f + (ci_f - ov_f)
        cy = f * cx + i * cell_t
        hy = out_s * jnp.tanh(cy)
        hx, cx = hy, cy
        outs.append(hy)

    lstm_out = jnp.concatenate(outs, axis=0)              # (T*B, H), one-time pack

    # ---- residual + LN + FFN + residual + LN (post-norm), exact reciprocal ----
    def layer_norm(v, gamma, beta):
        mean = jnp.mean(v, axis=-1, keepdims=True)
        # torch.Tensor.std is unbiased (N-1 divisor); eps is added to std (not var)
        var = jnp.sum((v - mean) ** 2, axis=-1, keepdims=True) * (1.0 / (D - 1))
        return gamma * (v - mean) / (jnp.sqrt(var) + EPS) + beta

    h = x + lstm_out                                      # residual + on_lstm output
    h = layer_norm(h, g1_ref[...], be1_ref[...])          # self_attn_layer_norm
    ffn = jnp.dot(h.astype(jnp.bfloat16), w1_ref[...],
                  preferred_element_type=jnp.float32) + b1_ref[...]
    ffn = jnp.maximum(ffn, 0.0)                           # relu activation
    ffn = jnp.dot(ffn.astype(jnp.bfloat16), w2_ref[...],
                  preferred_element_type=jnp.float32) + b2_ref[...]
    out_ref[...] = layer_norm(h + ffn, g2_ref[...], be2_ref[...])   # final LN, single store


# ===================== one-time parameter preparation ======================
def pack_params(params):
    """Repack / transpose / bias-fold / bf16-cast the weights once, off the per-call path.

    fairseq gate column order is [ci | cf | out | cell | in | f]; we repack to
    [out | cell | in | f | ci | cf] so the four H-wide gates sit tile-aligned at lane 0
    and the two n-wide chunk gates start exactly at lane 128.
    """
    (wih, bih, whh, bhh, g1, be1, w1, b1, w2, b2, g2, be2) = params
    n = N_CHUNK
    perm = jnp.concatenate([jnp.arange(2 * n, 2 * n + 4 * H), jnp.arange(0, 2 * n)])
    wih_t = jnp.take(wih.T, perm, axis=1).astype(jnp.bfloat16)      # (D, G)
    whh_t = jnp.take(whh.T, perm, axis=1).astype(jnp.bfloat16)      # (H, G)
    bias = jnp.take(bih + bhh, perm)[None, :].astype(jnp.float32)   # (1, G) both biases folded
    return (wih_t, whh_t, bias,
            g1[None, :], be1[None, :],
            w1.T.astype(jnp.bfloat16), b1[None, :],
            w2.T.astype(jnp.bfloat16), b2[None, :],
            g2[None, :], be2[None, :])


# ============================ full forward ==============================
@jax.jit
def ordered_transformer_encoder_layer(x, packed):
    N = T * B
    x_flat = x.reshape(N, D)

    def full(shp):
        return pl.BlockSpec(shp, lambda i: (0,) * len(shp))

    out_flat = pl.pallas_call(
        fused_kernel,
        out_shape=jax.ShapeDtypeStruct((N, D), jnp.float32),
        grid=(1,),
        in_specs=[
            full((N, D)),
            full((D, G)), full((H, G)), full((1, G)),
            full((1, D)), full((1, D)),
            full((D, FFN)), full((1, FFN)),
            full((FFN, D)), full((1, D)),
            full((1, D)), full((1, D)),
        ],
        out_specs=full((N, D)),
        compiler_params=pltpu.CompilerParams(dimension_semantics=("arbitrary",)),
    )(x_flat, *packed)
    return out_flat.reshape(T, B, D)


# ======================= pure-JAX reference (checking) ===================
def reference_forward(x, params):
    (wih, bih, whh, bhh, g1, be1, w1, b1, w2, b2, g2, be2) = params

    def cumsoftmax(z):
        return jnp.cumsum(jax.nn.softmax(z, axis=-1), axis=-1)

    def layer_norm(v, gamma, beta):
        mean = jnp.mean(v, axis=-1, keepdims=True)
        std = jnp.sqrt(jnp.sum((v - mean) ** 2, axis=-1, keepdims=True) / (v.shape[-1] - 1))
        return gamma * (v - mean) / (std + EPS) + beta

    hx = jnp.zeros((B, H), jnp.float32)
    cx = jnp.zeros((B, N_CHUNK, CHUNK), jnp.float32)
    outs = []
    for t in range(T):
        gates = x[t] @ wih.T + bih + hx @ whh.T + bhh
        ci_raw, cf_raw = gates[:, :N_CHUNK], gates[:, N_CHUNK:2 * N_CHUNK]
        rest = gates[:, 2 * N_CHUNK:].reshape(B, 4 * N_CHUNK, CHUNK)
        out_g, cell, in_g, f_g = (rest[:, :N_CHUNK], rest[:, N_CHUNK:2 * N_CHUNK],
                                  rest[:, 2 * N_CHUNK:3 * N_CHUNK], rest[:, 3 * N_CHUNK:])
        ci = (1.0 - cumsoftmax(ci_raw))[:, :, None]
        cf = cumsoftmax(cf_raw)[:, :, None]
        in_g = jax.nn.sigmoid(in_g)
        f_g = jax.nn.sigmoid(f_g)
        cell = jnp.tanh(cell)
        out_g = jax.nn.sigmoid(out_g)
        ov = cf * ci
        f_g = f_g * ov + (cf - ov)
        in_g = in_g * ov + (ci - ov)
        cy = f_g * cx + in_g * cell
        hy = out_g * jnp.tanh(cy)
        hx = hy.reshape(B, H)
        cx = cy
        outs.append(hx)
    lstm_out = jnp.stack(outs, axis=0)

    h = layer_norm(x + lstm_out, g1, be1)
    ffn = jnp.maximum(h @ w1.T + b1, 0.0) @ w2.T + b2
    return layer_norm(h + ffn, g2, be2)


# ================================ main ==================================
if __name__ == "__main__":
    key = jax.random.PRNGKey(0)
    ks = jax.random.split(key, 13)
    s = 0.1
    wih = jax.random.normal(ks[0], (G, D), jnp.float32) * s
    bih = jax.random.normal(ks[1], (G,), jnp.float32) * s
    whh = jax.random.normal(ks[2], (G, H), jnp.float32) * s
    bhh = jax.random.normal(ks[3], (G,), jnp.float32) * s
    g1 = 1.0 + 0.1 * jax.random.normal(ks[4], (D,), jnp.float32)
    be1 = 0.1 * jax.random.normal(ks[5], (D,), jnp.float32)
    w1 = jax.random.normal(ks[6], (FFN, D), jnp.float32) * s
    b1 = jax.random.normal(ks[7], (FFN,), jnp.float32) * s
    w2 = jax.random.normal(ks[8], (D, FFN), jnp.float32) * s
    b2 = jax.random.normal(ks[9], (D,), jnp.float32) * s
    g2 = 1.0 + 0.1 * jax.random.normal(ks[10], (D,), jnp.float32)
    be2 = 0.1 * jax.random.normal(ks[11], (D,), jnp.float32)
    params = (wih, bih, whh, bhh, g1, be1, w1, b1, w2, b2, g2, be2)

    x = jax.random.normal(ks[12], (T, B, D), jnp.float32)

    # one-time weight repack / bf16 cast (off the per-call path)
    packed = jax.block_until_ready(pack_params(params))

    out = ordered_transformer_encoder_layer(x, packed)
    out = jax.block_until_ready(out)

    ref = jax.block_until_ready(reference_forward(x, params))
    np.testing.assert_allclose(np.asarray(out), np.asarray(ref), atol=2e-2, rtol=2e-2)

    print("KERNEL_OK")
</pallas_src>

<mosaic_0001>
module attributes {stable_mosaic.version = 11 : i64} {
  func.func @fused_kernel(%arg0: i32, %arg1: memref<16x32xf32, #tpu.memory_space<vmem>>, %arg2: memref<32x136xbf16, #tpu.memory_space<vmem>>, %arg3: memref<32x136xbf16, #tpu.memory_space<vmem>>, %arg4: memref<1x136xf32, #tpu.memory_space<vmem>>, %arg5: memref<1x32xf32, #tpu.memory_space<vmem>>, %arg6: memref<1x32xf32, #tpu.memory_space<vmem>>, %arg7: memref<32x64xbf16, #tpu.memory_space<vmem>>, %arg8: memref<1x64xf32, #tpu.memory_space<vmem>>, %arg9: memref<64x32xbf16, #tpu.memory_space<vmem>>, %arg10: memref<1x32xf32, #tpu.memory_space<vmem>>, %arg11: memref<1x32xf32, #tpu.memory_space<vmem>>, %arg12: memref<1x32xf32, #tpu.memory_space<vmem>>, %arg13: memref<16x32xf32, #tpu.memory_space<vmem>>) attributes {dimension_semantics = [#tpu.dimension_semantics<arbitrary>], iteration_bounds = array<i64: 1>, scalar_prefetch = 0 : i64, scratch_operands = 0 : i64, tpu.core_type = #tpu.core_type<tc>, window_params = [{pipeline_mode = #tpu.pipeline_mode<synchronous>, transform_indices = @transform_0, window_bounds = array<i64: 16, 32>}, {pipeline_mode = #tpu.pipeline_mode<synchronous>, transform_indices = @transform_1, window_bounds = array<i64: 32, 136>}, {pipeline_mode = #tpu.pipeline_mode<synchronous>, transform_indices = @transform_2, window_bounds = array<i64: 32, 136>}, {pipeline_mode = #tpu.pipeline_mode<synchronous>, transform_indices = @transform_3, window_bounds = array<i64: 1, 136>}, {pipeline_mode = #tpu.pipeline_mode<synchronous>, transform_indices = @transform_4, window_bounds = array<i64: 1, 32>}, {pipeline_mode = #tpu.pipeline_mode<synchronous>, transform_indices = @transform_5, window_bounds = array<i64: 1, 32>}, {pipeline_mode = #tpu.pipeline_mode<synchronous>, transform_indices = @transform_6, window_bounds = array<i64: 32, 64>}, {pipeline_mode = #tpu.pipeline_mode<synchronous>, transform_indices = @transform_7, window_bounds = array<i64: 1, 64>}, {pipeline_mode = #tpu.pipeline_mode<synchronous>, transform_indices = @transform_8, window_bounds = array<i64: 64, 32>}, {pipeline_mode = #tpu.pipeline_mode<synchronous>, transform_indices = @transform_9, window_bounds = array<i64: 1, 32>}, {pipeline_mode = #tpu.pipeline_mode<synchronous>, transform_indices = @transform_10, window_bounds = array<i64: 1, 32>}, {pipeline_mode = #tpu.pipeline_mode<synchronous>, transform_indices = @transform_11, window_bounds = array<i64: 1, 32>}, {pipeline_mode = #tpu.pipeline_mode<synchronous>, transform_indices = @transform_12, window_bounds = array<i64: 16, 32>}]} {
    %0 = tpu.iota {dimensions = array<i32: 0>} : vector<4x32xi32>
    %1 = tpu.iota {dimensions = array<i32: 1>} : vector<4x32xi32>
    %c8_i32 = arith.constant 8 : i32
    %2 = vector.broadcast %c8_i32 : i32 to vector<4x32xi32>
    %3 = arith.muli %0, %2 : vector<4x32xi32>
    %4 = arith.cmpi sge, %1, %3 : vector<4x32xi32>
    %5 = arith.extui %4 : vector<4x32xi1> to vector<4x32xi32>
    %6 = arith.sitofp %5 : vector<4x32xi32> to vector<4x32xf32>
    %7 = arith.truncf %6 : vector<4x32xf32> to vector<4x32xbf16>
    %c0 = arith.constant 0 : index
    %c0_0 = arith.constant 0 : index
    %8 = vector.load %arg1[%c0, %c0_0] : memref<16x32xf32, #tpu.memory_space<vmem>>, vector<16x32xf32>
    %c0_1 = arith.constant 0 : index
    %c0_2 = arith.constant 0 : index
    %9 = vector.load %arg2[%c0_1, %c0_2] : memref<32x136xbf16, #tpu.memory_space<vmem>>, vector<32x136xbf16>
    %c0_3 = arith.constant 0 : index
    %c0_4 = arith.constant 0 : index
    %10 = vector.load %arg3[%c0_3, %c0_4] : memref<32x136xbf16, #tpu.memory_space<vmem>>, vector<32x136xbf16>
    %11 = arith.truncf %8 : vector<16x32xf32> to vector<16x32xbf16>
    %cst = arith.constant dense<0.000000e+00> : vector<16x136xf32>
    %12 = tpu.matmul %11, %9, %cst {dimension_numbers = #tpu.dot_dimension_numbers<[1], [0], [0], [1], [0, 0, 1, 1], [], []>} : vector<16x32xbf16>, vector<32x136xbf16>, vector<16x136xf32> -> vector<16x136xf32>
    %c0_5 = arith.constant 0 : index
    %c0_6 = arith.constant 0 : index
    %13 = vector.load %arg4[%c0_5, %c0_6] : memref<1x136xf32, #tpu.memory_space<vmem>>, vector<1x136xf32>
    %14 = vector.broadcast %13 : vector<1x136xf32> to vector<16x136xf32>
    %15 = arith.addf %12, %14 : vector<16x136xf32>
    %16 = vector.extract_strided_slice %15 {offsets = [0, 0], sizes = [2, 136], strides = [1, 1]} : vector<16x136xf32> to vector<2x136xf32>
    %17 = vector.extract_strided_slice %15 {offsets = [2, 0], sizes = [2, 136], strides = [1, 1]} : vector<16x136xf32> to vector<2x136xf32>
    %18 = vector.extract_strided_slice %15 {offsets = [4, 0], sizes = [2, 136], strides = [1, 1]} : vector<16x136xf32> to vector<2x136xf32>
    %19 = vector.extract_strided_slice %15 {offsets = [6, 0], sizes = [2, 136], strides = [1, 1]} : vector<16x136xf32> to vector<2x136xf32>
    %20 = vector.extract_strided_slice %15 {offsets = [8, 0], sizes = [2, 136], strides = [1, 1]} : vector<16x136xf32> to vector<2x136xf32>
    %21 = vector.extract_strided_slice %15 {offsets = [10, 0], sizes = [2, 136], strides = [1, 1]} : vector<16x136xf32> to vector<2x136xf32>
    %22 = vector.extract_strided_slice %15 {offsets = [12, 0], sizes = [2, 136], strides = [1, 1]} : vector<16x136xf32> to vector<2x136xf32>
    %23 = vector.extract_strided_slice %15 {offsets = [14, 0], sizes = [2, 136], strides = [1, 1]} : vector<16x136xf32> to vector<2x136xf32>
    %cst_7 = arith.constant 0.000000e+00 : f32
    %24 = vector.broadcast %cst_7 : f32 to vector<2x32xf32>
    %cst_8 = arith.constant 0.000000e+00 : f32
    %25 = vector.broadcast %cst_8 : f32 to vector<2x32xf32>
    %26 = arith.truncf %24 : vector<2x32xf32> to vector<2x32xbf16>
    %cst_9 = arith.constant dense<0.000000e+00> : vector<2x136xf32>
    %27 = tpu.matmul %26, %10, %cst_9 {dimension_numbers = #tpu.dot_dimension_numbers<[1], [0], [0], [1], [0, 0, 1, 1], [], []>} : vector<2x32xbf16>, vector<32x136xbf16>, vector<2x136xf32> -> vector<2x136xf32>
    %28 = arith.addf %16, %27 : vector<2x136xf32>
    %29 = vector.extract_strided_slice %28 {offsets = [0, 0], sizes = [2, 128], strides = [1, 1]} : vector<2x136xf32> to vector<2x128xf32>
    %30 = arith.negf %29 : vector<2x128xf32>
    %31 = math.exp %30 : vector<2x128xf32>
    %cst_10 = arith.constant 1.000000e+00 : f32
    %32 = vector.broadcast %cst_10 : f32 to vector<2x128xf32>
    %33 = arith.addf %32, %31 : vector<2x128xf32>
    %34 = arith.divf %32, %33 : vector<2x128xf32>
    %35 = vector.extract_strided_slice %34 {offsets = [0, 0], sizes = [2, 32], strides = [1, 1]} : vector<2x128xf32> to vector<2x32xf32>
    %36 = vector.extract_strided_slice %34 {offsets = [0, 64], sizes = [2, 32], strides = [1, 1]} : vector<2x128xf32> to vector<2x32xf32>
    %37 = vector.extract_strided_slice %34 {offsets = [0, 96], sizes = [2, 32], strides = [1, 1]} : vector<2x128xf32> to vector<2x32xf32>
    %38 = vector.extract_strided_slice %28 {offsets = [0, 32], sizes = [2, 32], strides = [1, 1]} : vector<2x136xf32> to vector<2x32xf32>
    %39 = math.tanh %38 : vector<2x32xf32>
    %40 = vector.extract_strided_slice %28 {offsets = [0, 128], sizes = [2, 8], strides = [1, 1]} : vector<2x136xf32> to vector<2x8xf32>
    %41 = vector.extract_strided_slice %40 {offsets = [0, 0], sizes = [2, 4], strides = [1, 1]} : vector<2x8xf32> to vector<2x4xf32>
    %42 = vector.extract_strided_slice %40 {offsets = [0, 4], sizes = [2, 4], strides = [1, 1]} : vector<2x8xf32> to vector<2x4xf32>
    %43 = tpu.concatenate %41, %42 in 0 : vector<2x4xf32>, vector<2x4xf32> -> vector<4x4xf32>
    %cst_11 = arith.constant dense<0xFF800000> : vector<4xf32>
    %44 = vector.multi_reduction <maximumf>, %43, %cst_11 [1] : vector<4x4xf32> to vector<4xf32>
    %45 = vector.shape_cast %44 : vector<4xf32> to vector<4x1xf32>
    %46 = vector.broadcast %45 : vector<4x1xf32> to vector<4x4xf32>
    %47 = arith.subf %43, %46 : vector<4x4xf32>
    %48 = math.exp %47 : vector<4x4xf32>
    %cst_12 = arith.constant dense<0.000000e+00> : vector<4xf32>
    %49 = vector.multi_reduction <add>, %48, %cst_12 [1] : vector<4x4xf32> to vector<4xf32>
    %50 = vector.shape_cast %49 : vector<4xf32> to vector<4x1xf32>
    %51 = arith.truncf %48 : vector<4x4xf32> to vector<4x4xbf16>
    %cst_13 = arith.constant dense<0.000000e+00> : vector<4x32xf32>
    %52 = tpu.matmul %51, %7, %cst_13 {dimension_numbers = #tpu.dot_dimension_numbers<[1], [0], [0], [1], [0, 0, 1, 1], [], []>} : vector<4x4xbf16>, vector<4x32xbf16>, vector<4x32xf32> -> vector<4x32xf32>
    %53 = tpu.reciprocal %50 {approx = true} : vector<4x1xf32> -> vector<4x1xf32>
    %54 = vector.broadcast %53 : vector<4x1xf32> to vector<4x32xf32>
    %55 = arith.mulf %52, %54 : vector<4x32xf32>
    %56 = vector.extract_strided_slice %55 {offsets = [0, 0], sizes = [2, 32], strides = [1, 1]} : vector<4x32xf32> to vector<2x32xf32>
    %cst_14 = arith.constant 1.000000e+00 : f32
    %57 = vector.broadcast %cst_14 : f32 to vector<2x32xf32>
    %58 = arith.subf %57, %56 : vector<2x32xf32>
    %59 = vector.extract_strided_slice %55 {offsets = [2, 0], sizes = [2, 32], strides = [1, 1]} : vector<4x32xf32> to vector<2x32xf32>
    %60 = arith.mulf %58, %59 : vector<2x32xf32>
    %61 = arith.mulf %37, %60 : vector<2x32xf32>
    %62 = arith.subf %59, %60 : vector<2x32xf32>
    %63 = arith.addf %61, %62 : vector<2x32xf32>
    %64 = arith.mulf %36, %60 : vector<2x32xf32>
    %65 = arith.subf %58, %60 : vector<2x32xf32>
    %66 = arith.addf %64, %65 : vector<2x32xf32>
    %67 = arith.mulf %63, %25 : vector<2x32xf32>
    %68 = arith.mulf %66, %39 : vector<2x32xf32>
    %69 = arith.addf %67, %68 : vector<2x32xf32>
    %70 = math.tanh %69 : vector<2x32xf32>
    %71 = arith.mulf %35, %70 : vector<2x32xf32>
    %72 = arith.truncf %71 : vector<2x32xf32> to vector<2x32xbf16>
    %cst_15 = arith.constant dense<0.000000e+00> : vector<2x136xf32>
    %73 = tpu.matmul %72, %10, %cst_15 {dimension_numbers = #tpu.dot_dimension_numbers<[1], [0], [0], [1], [0, 0, 1, 1], [], []>} : vector<2x32xbf16>, vector<32x136xbf16>, vector<2x136xf32> -> vector<2x136xf32>
    %74 = arith.addf %17, %73 : vector<2x136xf32>
    %75 = vector.extract_strided_slice %74 {offsets = [0, 0], sizes = [2, 128], strides = [1, 1]} : vector<2x136xf32> to vector<2x128xf32>
    %76 = arith.negf %75 : vector<2x128xf32>
    %77 = math.exp %76 : vector<2x128xf32>
    %cst_16 = arith.constant 1.000000e+00 : f32
    %78 = vector.broadcast %cst_16 : f32 to vector<2x128xf32>
    %79 = arith.addf %78, %77 : vector<2x128xf32>
    %80 = arith.divf %78, %79 : vector<2x128xf32>
    %81 = vector.extract_strided_slice %80 {offsets = [0, 0], sizes = [2, 32], strides = [1, 1]} : vector<2x128xf32> to vector<2x32xf32>
    %82 = vector.extract_strided_slice %80 {offsets = [0, 64], sizes = [2, 32], strides = [1, 1]} : vector<2x128xf32> to vector<2x32xf32>
    %83 = vector.extract_strided_slice %80 {offsets = [0, 96], sizes = [2, 32], strides = [1, 1]} : vector<2x128xf32> to vector<2x32xf32>
    %84 = vector.extract_strided_slice %74 {offsets = [0, 32], sizes = [2, 32], strides = [1, 1]} : vector<2x136xf32> to vector<2x32xf32>
    %85 = math.tanh %84 : vector<2x32xf32>
    %86 = vector.extract_strided_slice %74 {offsets = [0, 128], sizes = [2, 8], strides = [1, 1]} : vector<2x136xf32> to vector<2x8xf32>
    %87 = vector.extract_strided_slice %86 {offsets = [0, 0], sizes = [2, 4], strides = [1, 1]} : vector<2x8xf32> to vector<2x4xf32>
    %88 = vector.extract_strided_slice %86 {offsets = [0, 4], sizes = [2, 4], strides = [1, 1]} : vector<2x8xf32> to vector<2x4xf32>
    %89 = tpu.concatenate %87, %88 in 0 : vector<2x4xf32>, vector<2x4xf32> -> vector<4x4xf32>
    %cst_17 = arith.constant dense<0xFF800000> : vector<4xf32>
    %90 = vector.multi_reduction <maximumf>, %89, %cst_17 [1] : vector<4x4xf32> to vector<4xf32>
    %91 = vector.shape_cast %90 : vector<4xf32> to vector<4x1xf32>
    %92 = vector.broadcast %91 : vector<4x1xf32> to vector<4x4xf32>
    %93 = arith.subf %89, %92 : vector<4x4xf32>
    %94 = math.exp %93 : vector<4x4xf32>
    %cst_18 = arith.constant dense<0.000000e+00> : vector<4xf32>
    %95 = vector.multi_reduction <add>, %94, %cst_18 [1] : vector<4x4xf32> to vector<4xf32>
    %96 = vector.shape_cast %95 : vector<4xf32> to vector<4x1xf32>
    %97 = arith.truncf %94 : vector<4x4xf32> to vector<4x4xbf16>
    %cst_19 = arith.constant dense<0.000000e+00> : vector<4x32xf32>
    %98 = tpu.matmul %97, %7, %cst_19 {dimension_numbers = #tpu.dot_dimension_numbers<[1], [0], [0], [1], [0, 0, 1, 1], [], []>} : vector<4x4xbf16>, vector<4x32xbf16>, vector<4x32xf32> -> vector<4x32xf32>
    %99 = tpu.reciprocal %96 {approx = true} : vector<4x1xf32> -> vector<4x1xf32>
    %100 = vector.broadcast %99 : vector<4x1xf32> to vector<4x32xf32>
    %101 = arith.mulf %98, %100 : vector<4x32xf32>
    %102 = vector.extract_strided_slice %101 {offsets = [0, 0], sizes = [2, 32], strides = [1, 1]} : vector<4x32xf32> to vector<2x32xf32>
    %cst_20 = arith.constant 1.000000e+00 : f32
    %103 = vector.broadcast %cst_20 : f32 to vector<2x32xf32>
    %104 = arith.subf %103, %102 : vector<2x32xf32>
    %105 = vector.extract_strided_slice %101 {offsets = [2, 0], sizes = [2, 32], strides = [1, 1]} : vector<4x32xf32> to vector<2x32xf32>
    %106 = arith.mulf %104, %105 : vector<2x32xf32>
    %107 = arith.mulf %83, %106 : vector<2x32xf32>
    %108 = arith.subf %105, %106 : vector<2x32xf32>
    %109 = arith.addf %107, %108 : vector<2x32xf32>
    %110 = arith.mulf %82, %106 : vector<2x32xf32>
    %111 = arith.subf %104, %106 : vector<2x32xf32>
    %112 = arith.addf %110, %111 : vector<2x32xf32>
    %113 = arith.mulf %109, %69 : vector<2x32xf32>
    %114 = arith.mulf %112, %85 : vector<2x32xf32>
    %115 = arith.addf %113, %114 : vector<2x32xf32>
    %116 = math.tanh %115 : vector<2x32xf32>
    %117 = arith.mulf %81, %116 : vector<2x32xf32>
    %118 = arith.truncf %117 : vector<2x32xf32> to vector<2x32xbf16>
    %cst_21 = arith.constant dense<0.000000e+00> : vector<2x136xf32>
    %119 = tpu.matmul %118, %10, %cst_21 {dimension_numbers = #tpu.dot_dimension_numbers<[1], [0], [0], [1], [0, 0, 1, 1], [], []>} : vector<2x32xbf16>, vector<32x136xbf16>, vector<2x136xf32> -> vector<2x136xf32>
    %120 = arith.addf %18, %119 : vector<2x136xf32>
    %121 = vector.extract_strided_slice %120 {offsets = [0, 0], sizes = [2, 128], strides = [1, 1]} : vector<2x136xf32> to vector<2x128xf32>
    %122 = arith.negf %121 : vector<2x128xf32>
    %123 = math.exp %122 : vector<2x128xf32>
    %cst_22 = arith.constant 1.000000e+00 : f32
    %124 = vector.broadcast %cst_22 : f32 to vector<2x128xf32>
    %125 = arith.addf %124, %123 : vector<2x128xf32>
    %126 = arith.divf %124, %125 : vector<2x128xf32>
    %127 = vector.extract_strided_slice %126 {offsets = [0, 0], sizes = [2, 32], strides = [1, 1]} : vector<2x128xf32> to vector<2x32xf32>
    %128 = vector.extract_strided_slice %126 {offsets = [0, 64], sizes = [2, 32], strides = [1, 1]} : vector<2x128xf32> to vector<2x32xf32>
    %129 = vector.extract_strided_slice %126 {offsets = [0, 96], sizes = [2, 32], strides = [1, 1]} : vector<2x128xf32> to vector<2x32xf32>
    %130 = vector.extract_strided_slice %120 {offsets = [0, 32], sizes = [2, 32], strides = [1, 1]} : vector<2x136xf32> to vector<2x32xf32>
    %131 = math.tanh %130 : vector<2x32xf32>
    %132 = vector.extract_strided_slice %120 {offsets = [0, 128], sizes = [2, 8], strides = [1, 1]} : vector<2x136xf32> to vector<2x8xf32>
    %133 = vector.extract_strided_slice %132 {offsets = [0, 0], sizes = [2, 4], strides = [1, 1]} : vector<2x8xf32> to vector<2x4xf32>
    %134 = vector.extract_strided_slice %132 {offsets = [0, 4], sizes = [2, 4], strides = [1, 1]} : vector<2x8xf32> to vector<2x4xf32>
    %135 = tpu.concatenate %133, %134 in 0 : vector<2x4xf32>, vector<2x4xf32> -> vector<4x4xf32>
    %cst_23 = arith.constant dense<0xFF800000> : vector<4xf32>
    %136 = vector.multi_reduction <maximumf>, %135, %cst_23 [1] : vector<4x4xf32> to vector<4xf32>
    %137 = vector.shape_cast %136 : vector<4xf32> to vector<4x1xf32>
    %138 = vector.broadcast %137 : vector<4x1xf32> to vector<4x4xf32>
    %139 = arith.subf %135, %138 : vector<4x4xf32>
    %140 = math.exp %139 : vector<4x4xf32>
    %cst_24 = arith.constant dense<0.000000e+00> : vector<4xf32>
    %141 = vector.multi_reduction <add>, %140, %cst_24 [1] : vector<4x4xf32> to vector<4xf32>
    %142 = vector.shape_cast %141 : vector<4xf32> to vector<4x1xf32>
    %143 = arith.truncf %140 : vector<4x4xf32> to vector<4x4xbf16>
    %cst_25 = arith.constant dense<0.000000e+00> : vector<4x32xf32>
    %144 = tpu.matmul %143, %7, %cst_25 {dimension_numbers = #tpu.dot_dimension_numbers<[1], [0], [0], [1], [0, 0, 1, 1], [], []>} : vector<4x4xbf16>, vector<4x32xbf16>, vector<4x32xf32> -> vector<4x32xf32>
    %145 = tpu.reciprocal %142 {approx = true} : vector<4x1xf32> -> vector<4x1xf32>
    %146 = vector.broadcast %145 : vector<4x1xf32> to vector<4x32xf32>
    %147 = arith.mulf %144, %146 : vector<4x32xf32>
    %148 = vector.extract_strided_slice %147 {offsets = [0, 0], sizes = [2, 32], strides = [1, 1]} : vector<4x32xf32> to vector<2x32xf32>
    %cst_26 = arith.constant 1.000000e+00 : f32
    %149 = vector.broadcast %cst_26 : f32 to vector<2x32xf32>
    %150 = arith.subf %149, %148 : vector<2x32xf32>
    %151 = vector.extract_strided_slice %147 {offsets = [2, 0], sizes = [2, 32], strides = [1, 1]} : vector<4x32xf32> to vector<2x32xf32>
    %152 = arith.mulf %150, %151 : vector<2x32xf32>
    %153 = arith.mulf %129, %152 : vector<2x32xf32>
    %154 = arith.subf %151, %152 : vector<2x32xf32>
    %155 = arith.addf %153, %154 : vector<2x32xf32>
    %156 = arith.mulf %128, %152 : vector<2x32xf32>
    %157 = arith.subf %150, %152 : vector<2x32xf32>
    %158 = arith.addf %156, %157 : vector<2x32xf32>
    %159 = arith.mulf %155, %115 : vector<2x32xf32>
    %160 = arith.mulf %158, %131 : vector<2x32xf32>
    %161 = arith.addf %159, %160 : vector<2x32xf32>
    %162 = math.tanh %161 : vector<2x32xf32>
    %163 = arith.mulf %127, %162 : vector<2x32xf32>
    %164 = arith.truncf %163 : vector<2x32xf32> to vector<2x32xbf16>
    %cst_27 = arith.constant dense<0.000000e+00> : vector<2x136xf32>
    %165 = tpu.matmul %164, %10, %cst_27 {dimension_numbers = #tpu.dot_dimension_numbers<[1], [0], [0], [1], [0, 0, 1, 1], [], []>} : vector<2x32xbf16>, vector<32x136xbf16>, vector<2x136xf32> -> vector<2x136xf32>
    %166 = arith.addf %19, %165 : vector<2x136xf32>
    %167 = vector.extract_strided_slice %166 {offsets = [0, 0], sizes = [2, 128], strides = [1, 1]} : vector<2x136xf32> to vector<2x128xf32>
    %168 = arith.negf %167 : vector<2x128xf32>
    %169 = math.exp %168 : vector<2x128xf32>
    %cst_28 = arith.constant 1.000000e+00 : f32
    %170 = vector.broadcast %cst_28 : f32 to vector<2x128xf32>
    %171 = arith.addf %170, %169 : vector<2x128xf32>
    %172 = arith.divf %170, %171 : vector<2x128xf32>
    %173 = vector.extract_strided_slice %172 {offsets = [0, 0], sizes = [2, 32], strides = [1, 1]} : vector<2x128xf32> to vector<2x32xf32>
    %174 = vector.extract_strided_slice %172 {offsets = [0, 64], sizes = [2, 32], strides = [1, 1]} : vector<2x128xf32> to vector<2x32xf32>
    %175 = vector.extract_strided_slice %172 {offsets = [0, 96], sizes = [2, 32], strides = [1, 1]} : vector<2x128xf32> to vector<2x32xf32>
    %176 = vector.extract_strided_slice %166 {offsets = [0, 32], sizes = [2, 32], strides = [1, 1]} : vector<2x136xf32> to vector<2x32xf32>
    %177 = math.tanh %176 : vector<2x32xf32>
    %178 = vector.extract_strided_slice %166 {offsets = [0, 128], sizes = [2, 8], strides = [1, 1]} : vector<2x136xf32> to vector<2x8xf32>
    %179 = vector.extract_strided_slice %178 {offsets = [0, 0], sizes = [2, 4], strides = [1, 1]} : vector<2x8xf32> to vector<2x4xf32>
    %180 = vector.extract_strided_slice %178 {offsets = [0, 4], sizes = [2, 4], strides = [1, 1]} : vector<2x8xf32> to vector<2x4xf32>
    %181 = tpu.concatenate %179, %180 in 0 : vector<2x4xf32>, vector<2x4xf32> -> vector<4x4xf32>
    %cst_29 = arith.constant dense<0xFF800000> : vector<4xf32>
    %182 = vector.multi_reduction <maximumf>, %181, %cst_29 [1] : vector<4x4xf32> to vector<4xf32>
    %183 = vector.shape_cast %182 : vector<4xf32> to vector<4x1xf32>
    %184 = vector.broadcast %183 : vector<4x1xf32> to vector<4x4xf32>
    %185 = arith.subf %181, %184 : vector<4x4xf32>
    %186 = math.exp %185 : vector<4x4xf32>
    %cst_30 = arith.constant dense<0.000000e+00> : vector<4xf32>
    %187 = vector.multi_reduction <add>, %186, %cst_30 [1] : vector<4x4xf32> to vector<4xf32>
    %188 = vector.shape_cast %187 : vector<4xf32> to vector<4x1xf32>
    %189 = arith.truncf %186 : vector<4x4xf32> to vector<4x4xbf16>
    %cst_31 = arith.constant dense<0.000000e+00> : vector<4x32xf32>
    %190 = tpu.matmul %189, %7, %cst_31 {dimension_numbers = #tpu.dot_dimension_numbers<[1], [0], [0], [1], [0, 0, 1, 1], [], []>} : vector<4x4xbf16>, vector<4x32xbf16>, vector<4x32xf32> -> vector<4x32xf32>
    %191 = tpu.reciprocal %188 {approx = true} : vector<4x1xf32> -> vector<4x1xf32>
    %192 = vector.broadcast %191 : vector<4x1xf32> to vector<4x32xf32>
    %193 = arith.mulf %190, %192 : vector<4x32xf32>
    %194 = vector.extract_strided_slice %193 {offsets = [0, 0], sizes = [2, 32], strides = [1, 1]} : vector<4x32xf32> to vector<2x32xf32>
    %cst_32 = arith.constant 1.000000e+00 : f32
    %195 = vector.broadcast %cst_32 : f32 to vector<2x32xf32>
    %196 = arith.subf %195, %194 : vector<2x32xf32>
    %197 = vector.extract_strided_slice %193 {offsets = [2, 0], sizes = [2, 32], strides = [1, 1]} : vector<4x32xf32> to vector<2x32xf32>
    %198 = arith.mulf %196, %197 : vector<2x32xf32>
    %199 = arith.mulf %175, %198 : vector<2x32xf32>
    %200 = arith.subf %197, %198 : vector<2x32xf32>
    %201 = arith.addf %199, %200 : vector<2x32xf32>
    %202 = arith.mulf %174, %198 : vector<2x32xf32>
    %203 = arith.subf %196, %198 : vector<2x32xf32>
    %204 = arith.addf %202, %203 : vector<2x32xf32>
    %205 = arith.mulf %201, %161 : vector<2x32xf32>
    %206 = arith.mulf %204, %177 : vector<2x32xf32>
    %207 = arith.addf %205, %206 : vector<2x32xf32>
    %208 = math.tanh %207 : vector<2x32xf32>
    %209 = arith.mulf %173, %208 : vector<2x32xf32>
    %210 = arith.truncf %209 : vector<2x32xf32> to vector<2x32xbf16>
    %cst_33 = arith.constant dense<0.000000e+00> : vector<2x136xf32>
    %211 = tpu.matmul %210, %10, %cst_33 {dimension_numbers = #tpu.dot_dimension_numbers<[1], [0], [0], [1], [0, 0, 1, 1], [], []>} : vector<2x32xbf16>, vector<32x136xbf16>, vector<2x136xf32> -> vector<2x136xf32>
    %212 = arith.addf %20, %211 : vector<2x136xf32>
    %213 = vector.extract_strided_slice %212 {offsets = [0, 0], sizes = [2, 128], strides = [1, 1]} : vector<2x136xf32> to vector<2x128xf32>
    %214 = arith.negf %213 : vector<2x128xf32>
    %215 = math.exp %214 : vector<2x128xf32>
    %cst_34 = arith.constant 1.000000e+00 : f32
    %216 = vector.broadcast %cst_34 : f32 to vector<2x128xf32>
    %217 = arith.addf %216, %215 : vector<2x128xf32>
    %218 = arith.divf %216, %217 : vector<2x128xf32>
    %219 = vector.extract_strided_slice %218 {offsets = [0, 0], sizes = [2, 32], strides = [1, 1]} : vector<2x128xf32> to vector<2x32xf32>
    %220 = vector.extract_strided_slice %218 {offsets = [0, 64], sizes = [2, 32], strides = [1, 1]} : vector<2x128xf32> to vector<2x32xf32>
    %221 = vector.extract_strided_slice %218 {offsets = [0, 96], sizes = [2, 32], strides = [1, 1]} : vector<2x128xf32> to vector<2x32xf32>
    %222 = vector.extract_strided_slice %212 {offsets = [0, 32], sizes = [2, 32], strides = [1, 1]} : vector<2x136xf32> to vector<2x32xf32>
    %223 = math.tanh %222 : vector<2x32xf32>
    %224 = vector.extract_strided_slice %212 {offsets = [0, 128], sizes = [2, 8], strides = [1, 1]} : vector<2x136xf32> to vector<2x8xf32>
    %225 = vector.extract_strided_slice %224 {offsets = [0, 0], sizes = [2, 4], strides = [1, 1]} : vector<2x8xf32> to vector<2x4xf32>
    %226 = vector.extract_strided_slice %224 {offsets = [0, 4], sizes = [2, 4], strides = [1, 1]} : vector<2x8xf32> to vector<2x4xf32>
    %227 = tpu.concatenate %225, %226 in 0 : vector<2x4xf32>, vector<2x4xf32> -> vector<4x4xf32>
    %cst_35 = arith.constant dense<0xFF800000> : vector<4xf32>
    %228 = vector.multi_reduction <maximumf>, %227, %cst_35 [1] : vector<4x4xf32> to vector<4xf32>
    %229 = vector.shape_cast %228 : vector<4xf32> to vector<4x1xf32>
    %230 = vector.broadcast %229 : vector<4x1xf32> to vector<4x4xf32>
    %231 = arith.subf %227, %230 : vector<4x4xf32>
    %232 = math.exp %231 : vector<4x4xf32>
    %cst_36 = arith.constant dense<0.000000e+00> : vector<4xf32>
    %233 = vector.multi_reduction <add>, %232, %cst_36 [1] : vector<4x4xf32> to vector<4xf32>
    %234 = vector.shape_cast %233 : vector<4xf32> to vector<4x1xf32>
    %235 = arith.truncf %232 : vector<4x4xf32> to vector<4x4xbf16>
    %cst_37 = arith.constant dense<0.000000e+00> : vector<4x32xf32>
    %236 = tpu.matmul %235, %7, %cst_37 {dimension_numbers = #tpu.dot_dimension_numbers<[1], [0], [0], [1], [0, 0, 1, 1], [], []>} : vector<4x4xbf16>, vector<4x32xbf16>, vector<4x32xf32> -> vector<4x32xf32>
    %237 = tpu.reciprocal %234 {approx = true} : vector<4x1xf32> -> vector<4x1xf32>
    %238 = vector.broadcast %237 : vector<4x1xf32> to vector<4x32xf32>
    %239 = arith.mulf %236, %238 : vector<4x32xf32>
    %240 = vector.extract_strided_slice %239 {offsets = [0, 0], sizes = [2, 32], strides = [1, 1]} : vector<4x32xf32> to vector<2x32xf32>
    %cst_38 = arith.constant 1.000000e+00 : f32
    %241 = vector.broadcast %cst_38 : f32 to vector<2x32xf32>
    %242 = arith.subf %241, %240 : vector<2x32xf32>
    %243 = vector.extract_strided_slice %239 {offsets = [2, 0], sizes = [2, 32], strides = [1, 1]} : vector<4x32xf32> to vector<2x32xf32>
    %244 = arith.mulf %242, %243 : vector<2x32xf32>
    %245 = arith.mulf %221, %244 : vector<2x32xf32>
    %246 = arith.subf %243, %244 : vector<2x32xf32>
    %247 = arith.addf %245, %246 : vector<2x32xf32>
    %248 = arith.mulf %220, %244 : vector<2x32xf32>
    %249 = arith.subf %242, %244 : vector<2x32xf32>
    %250 = arith.addf %248, %249 : vector<2x32xf32>
    %251 = arith.mulf %247, %207 : vector<2x32xf32>
    %252 = arith.mulf %250, %223 : vector<2x32xf32>
    %253 = arith.addf %251, %252 : vector<2x32xf32>
    %254 = math.tanh %253 : vector<2x32xf32>
    %255 = arith.mulf %219, %254 : vector<2x32xf32>
    %256 = arith.truncf %255 : vector<2x32xf32> to vector<2x32xbf16>
    %cst_39 = arith.constant dense<0.000000e+00> : vector<2x136xf32>
    %257 = tpu.matmul %256, %10, %cst_39 {dimension_numbers = #tpu.dot_dimension_numbers<[1], [0], [0], [1], [0, 0, 1, 1], [], []>} : vector<2x32xbf16>, vector<32x136xbf16>, vector<2x136xf32> -> vector<2x136xf32>
    %258 = arith.addf %21, %257 : vector<2x136xf32>
    %259 = vector.extract_strided_slice %258 {offsets = [0, 0], sizes = [2, 128], strides = [1, 1]} : vector<2x136xf32> to vector<2x128xf32>
    %260 = arith.negf %259 : vector<2x128xf32>
    %261 = math.exp %260 : vector<2x128xf32>
    %cst_40 = arith.constant 1.000000e+00 : f32
    %262 = vector.broadcast %cst_40 : f32 to vector<2x128xf32>
    %263 = arith.addf %262, %261 : vector<2x128xf32>
    %264 = arith.divf %262, %263 : vector<2x128xf32>
    %265 = vector.extract_strided_slice %264 {offsets = [0, 0], sizes = [2, 32], strides = [1, 1]} : vector<2x128xf32> to vector<2x32xf32>
    %266 = vector.extract_strided_slice %264 {offsets = [0, 64], sizes = [2, 32], strides = [1, 1]} : vector<2x128xf32> to vector<2x32xf32>
    %267 = vector.extract_strided_slice %264 {offsets = [0, 96], sizes = [2, 32], strides = [1, 1]} : vector<2x128xf32> to vector<2x32xf32>
    %268 = vector.extract_strided_slice %258 {offsets = [0, 32], sizes = [2, 32], strides = [1, 1]} : vector<2x136xf32> to vector<2x32xf32>
    %269 = math.tanh %268 : vector<2x32xf32>
    %270 = vector.extract_strided_slice %258 {offsets = [0, 128], sizes = [2, 8], strides = [1, 1]} : vector<2x136xf32> to vector<2x8xf32>
    %271 = vector.extract_strided_slice %270 {offsets = [0, 0], sizes = [2, 4], strides = [1, 1]} : vector<2x8xf32> to vector<2x4xf32>
    %272 = vector.extract_strided_slice %270 {offsets = [0, 4], sizes = [2, 4], strides = [1, 1]} : vector<2x8xf32> to vector<2x4xf32>
    %273 = tpu.concatenate %271, %272 in 0 : vector<2x4xf32>, vector<2x4xf32> -> vector<4x4xf32>
    %cst_41 = arith.constant dense<0xFF800000> : vector<4xf32>
    %274 = vector.multi_reduction <maximumf>, %273, %cst_41 [1] : vector<4x4xf32> to vector<4xf32>
    %275 = vector.shape_cast %274 : vector<4xf32> to vector<4x1xf32>
    %276 = vector.broadcast %275 : vector<4x1xf32> to vector<4x4xf32>
    %277 = arith.subf %273, %276 : vector<4x4xf32>
    %278 = math.exp %277 : vector<4x4xf32>
    %cst_42 = arith.constant dense<0.000000e+00> : vector<4xf32>
    %279 = vector.multi_reduction <add>, %278, %cst_42 [1] : vector<4x4xf32> to vector<4xf32>
    %280 = vector.shape_cast %279 : vector<4xf32> to vector<4x1xf32>
    %281 = arith.truncf %278 : vector<4x4xf32> to vector<4x4xbf16>
    %cst_43 = arith.constant dense<0.000000e+00> : vector<4x32xf32>
    %282 = tpu.matmul %281, %7, %cst_43 {dimension_numbers = #tpu.dot_dimension_numbers<[1], [0], [0], [1], [0, 0, 1, 1], [], []>} : vector<4x4xbf16>, vector<4x32xbf16>, vector<4x32xf32> -> vector<4x32xf32>
    %283 = tpu.reciprocal %280 {approx = true} : vector<4x1xf32> -> vector<4x1xf32>
    %284 = vector.broadcast %283 : vector<4x1xf32> to vector<4x32xf32>
    %285 = arith.mulf %282, %284 : vector<4x32xf32>
    %286 = vector.extract_strided_slice %285 {offsets = [0, 0], sizes = [2, 32], strides = [1, 1]} : vector<4x32xf32> to vector<2x32xf32>
    %cst_44 = arith.constant 1.000000e+00 : f32
    %287 = vector.broadcast %cst_44 : f32 to vector<2x32xf32>
    %288 = arith.subf %287, %286 : vector<2x32xf32>
    %289 = vector.extract_strided_slice %285 {offsets = [2, 0], sizes = [2, 32], strides = [1, 1]} : vector<4x32xf32> to vector<2x32xf32>
    %290 = arith.mulf %288, %289 : vector<2x32xf32>
    %291 = arith.mulf %267, %290 : vector<2x32xf32>
    %292 = arith.subf %289, %290 : vector<2x32xf32>
    %293 = arith.addf %291, %292 : vector<2x32xf32>
    %294 = arith.mulf %266, %290 : vector<2x32xf32>
    %295 = arith.subf %288, %290 : vector<2x32xf32>
    %296 = arith.addf %294, %295 : vector<2x32xf32>
    %297 = arith.mulf %293, %253 : vector<2x32xf32>
    %298 = arith.mulf %296, %269 : vector<2x32xf32>
    %299 = arith.addf %297, %298 : vector<2x32xf32>
    %300 = math.tanh %299 : vector<2x32xf32>
    %301 = arith.mulf %265, %300 : vector<2x32xf32>
    %302 = arith.truncf %301 : vector<2x32xf32> to vector<2x32xbf16>
    %cst_45 = arith.constant dense<0.000000e+00> : vector<2x136xf32>
    %303 = tpu.matmul %302, %10, %cst_45 {dimension_numbers = #tpu.dot_dimension_numbers<[1], [0], [0], [1], [0, 0, 1, 1], [], []>} : vector<2x32xbf16>, vector<32x136xbf16>, vector<2x136xf32> -> vector<2x136xf32>
    %304 = arith.addf %22, %303 : vector<2x136xf32>
    %305 = vector.extract_strided_slice %304 {offsets = [0, 0], sizes = [2, 128], strides = [1, 1]} : vector<2x136xf32> to vector<2x128xf32>
    %306 = arith.negf %305 : vector<2x128xf32>
    %307 = math.exp %306 : vector<2x128xf32>
    %cst_46 = arith.constant 1.000000e+00 : f32
    %308 = vector.broadcast %cst_46 : f32 to vector<2x128xf32>
    %309 = arith.addf %308, %307 : vector<2x128xf32>
    %310 = arith.divf %308, %309 : vector<2x128xf32>
    %311 = vector.extract_strided_slice %310 {offsets = [0, 0], sizes = [2, 32], strides = [1, 1]} : vector<2x128xf32> to vector<2x32xf32>
    %312 = vector.extract_strided_slice %310 {offsets = [0, 64], sizes = [2, 32], strides = [1, 1]} : vector<2x128xf32> to vector<2x32xf32>
    %313 = vector.extract_strided_slice %310 {offsets = [0, 96], sizes = [2, 32], strides = [1, 1]} : vector<2x128xf32> to vector<2x32xf32>
    %314 = vector.extract_strided_slice %304 {offsets = [0, 32], sizes = [2, 32], strides = [1, 1]} : vector<2x136xf32> to vector<2x32xf32>
    %315 = math.tanh %314 : vector<2x32xf32>
    %316 = vector.extract_strided_slice %304 {offsets = [0, 128], sizes = [2, 8], strides = [1, 1]} : vector<2x136xf32> to vector<2x8xf32>
    %317 = vector.extract_strided_slice %316 {offsets = [0, 0], sizes = [2, 4], strides = [1, 1]} : vector<2x8xf32> to vector<2x4xf32>
    %318 = vector.extract_strided_slice %316 {offsets = [0, 4], sizes = [2, 4], strides = [1, 1]} : vector<2x8xf32> to vector<2x4xf32>
    %319 = tpu.concatenate %317, %318 in 0 : vector<2x4xf32>, vector<2x4xf32> -> vector<4x4xf32>
    %cst_47 = arith.constant dense<0xFF800000> : vector<4xf32>
    %320 = vector.multi_reduction <maximumf>, %319, %cst_47 [1] : vector<4x4xf32> to vector<4xf32>
    %321 = vector.shape_cast %320 : vector<4xf32> to vector<4x1xf32>
    %322 = vector.broadcast %321 : vector<4x1xf32> to vector<4x4xf32>
    %323 = arith.subf %319, %322 : vector<4x4xf32>
    %324 = math.exp %323 : vector<4x4xf32>
    %cst_48 = arith.constant dense<0.000000e+00> : vector<4xf32>
    %325 = vector.multi_reduction <add>, %324, %cst_48 [1] : vector<4x4xf32> to vector<4xf32>
    %326 = vector.shape_cast %325 : vector<4xf32> to vector<4x1xf32>
    %327 = arith.truncf %324 : vector<4x4xf32> to vector<4x4xbf16>
    %cst_49 = arith.constant dense<0.000000e+00> : vector<4x32xf32>
    %328 = tpu.matmul %327, %7, %cst_49 {dimension_numbers = #tpu.dot_dimension_numbers<[1], [0], [0], [1], [0, 0, 1, 1], [], []>} : vector<4x4xbf16>, vector<4x32xbf16>, vector<4x32xf32> -> vector<4x32xf32>
    %329 = tpu.reciprocal %326 {approx = true} : vector<4x1xf32> -> vector<4x1xf32>
    %330 = vector.broadcast %329 : vector<4x1xf32> to vector<4x32xf32>
    %331 = arith.mulf %328, %330 : vector<4x32xf32>
    %332 = vector.extract_strided_slice %331 {offsets = [0, 0], sizes = [2, 32], strides = [1, 1]} : vector<4x32xf32> to vector<2x32xf32>
    %cst_50 = arith.constant 1.000000e+00 : f32
    %333 = vector.broadcast %cst_50 : f32 to vector<2x32xf32>
    %334 = arith.subf %333, %332 : vector<2x32xf32>
    %335 = vector.extract_strided_slice %331 {offsets = [2, 0], sizes = [2, 32], strides = [1, 1]} : vector<4x32xf32> to vector<2x32xf32>
    %336 = arith.mulf %334, %335 : vector<2x32xf32>
    %337 = arith.mulf %313, %336 : vector<2x32xf32>
    %338 = arith.subf %335, %336 : vector<2x32xf32>
    %339 = arith.addf %337, %338 : vector<2x32xf32>
    %340 = arith.mulf %312, %336 : vector<2x32xf32>
    %341 = arith.subf %334, %336 : vector<2x32xf32>
    %342 = arith.addf %340, %341 : vector<2x32xf32>
    %343 = arith.mulf %339, %299 : vector<2x32xf32>
    %344 = arith.mulf %342, %315 : vector<2x32xf32>
    %345 = arith.addf %343, %344 : vector<2x32xf32>
    %346 = math.tanh %345 : vector<2x32xf32>
    %347 = arith.mulf %311, %346 : vector<2x32xf32>
    %348 = arith.truncf %347 : vector<2x32xf32> to vector<2x32xbf16>
    %cst_51 = arith.constant dense<0.000000e+00> : vector<2x136xf32>
    %349 = tpu.matmul %348, %10, %cst_51 {dimension_numbers = #tpu.dot_dimension_numbers<[1], [0], [0], [1], [0, 0, 1, 1], [], []>} : vector<2x32xbf16>, vector<32x136xbf16>, vector<2x136xf32> -> vector<2x136xf32>
    %350 = arith.addf %23, %349 : vector<2x136xf32>
    %351 = vector.extract_strided_slice %350 {offsets = [0, 0], sizes = [2, 128], strides = [1, 1]} : vector<2x136xf32> to vector<2x128xf32>
    %352 = arith.negf %351 : vector<2x128xf32>
    %353 = math.exp %352 : vector<2x128xf32>
    %cst_52 = arith.constant 1.000000e+00 : f32
    %354 = vector.broadcast %cst_52 : f32 to vector<2x128xf32>
    %355 = arith.addf %354, %353 : vector<2x128xf32>
    %356 = arith.divf %354, %355 : vector<2x128xf32>
    %357 = vector.extract_strided_slice %356 {offsets = [0, 0], sizes = [2, 32], strides = [1, 1]} : vector<2x128xf32> to vector<2x32xf32>
    %358 = vector.extract_strided_slice %356 {offsets = [0, 64], sizes = [2, 32], strides = [1, 1]} : vector<2x128xf32> to vector<2x32xf32>
    %359 = vector.extract_strided_slice %356 {offsets = [0, 96], sizes = [2, 32], strides = [1, 1]} : vector<2x128xf32> to vector<2x32xf32>
    %360 = vector.extract_strided_slice %350 {offsets = [0, 32], sizes = [2, 32], strides = [1, 1]} : vector<2x136xf32> to vector<2x32xf32>
    %361 = math.tanh %360 : vector<2x32xf32>
    %362 = vector.extract_strided_slice %350 {offsets = [0, 128], sizes = [2, 8], strides = [1, 1]} : vector<2x136xf32> to vector<2x8xf32>
    %363 = vector.extract_strided_slice %362 {offsets = [0, 0], sizes = [2, 4], strides = [1, 1]} : vector<2x8xf32> to vector<2x4xf32>
    %364 = vector.extract_strided_slice %362 {offsets = [0, 4], sizes = [2, 4], strides = [1, 1]} : vector<2x8xf32> to vector<2x4xf32>
    %365 = tpu.concatenate %363, %364 in 0 : vector<2x4xf32>, vector<2x4xf32> -> vector<4x4xf32>
    %cst_53 = arith.constant dense<0xFF800000> : vector<4xf32>
    %366 = vector.multi_reduction <maximumf>, %365, %cst_53 [1] : vector<4x4xf32> to vector<4xf32>
    %367 = vector.shape_cast %366 : vector<4xf32> to vector<4x1xf32>
    %368 = vector.broadcast %367 : vector<4x1xf32> to vector<4x4xf32>
    %369 = arith.subf %365, %368 : vector<4x4xf32>
    %370 = math.exp %369 : vector<4x4xf32>
    %cst_54 = arith.constant dense<0.000000e+00> : vector<4xf32>
    %371 = vector.multi_reduction <add>, %370, %cst_54 [1] : vector<4x4xf32> to vector<4xf32>
    %372 = vector.shape_cast %371 : vector<4xf32> to vector<4x1xf32>
    %373 = arith.truncf %370 : vector<4x4xf32> to vector<4x4xbf16>
    %cst_55 = arith.constant dense<0.000000e+00> : vector<4x32xf32>
    %374 = tpu.matmul %373, %7, %cst_55 {dimension_numbers = #tpu.dot_dimension_numbers<[1], [0], [0], [1], [0, 0, 1, 1], [], []>} : vector<4x4xbf16>, vector<4x32xbf16>, vector<4x32xf32> -> vector<4x32xf32>
    %375 = tpu.reciprocal %372 {approx = true} : vector<4x1xf32> -> vector<4x1xf32>
    %376 = vector.broadcast %375 : vector<4x1xf32> to vector<4x32xf32>
    %377 = arith.mulf %374, %376 : vector<4x32xf32>
    %378 = vector.extract_strided_slice %377 {offsets = [0, 0], sizes = [2, 32], strides = [1, 1]} : vector<4x32xf32> to vector<2x32xf32>
    %cst_56 = arith.constant 1.000000e+00 : f32
    %379 = vector.broadcast %cst_56 : f32 to vector<2x32xf32>
    %380 = arith.subf %379, %378 : vector<2x32xf32>
    %381 = vector.extract_strided_slice %377 {offsets = [2, 0], sizes = [2, 32], strides = [1, 1]} : vector<4x32xf32> to vector<2x32xf32>
    %382 = arith.mulf %380, %381 : vector<2x32xf32>
    %383 = arith.mulf %359, %382 : vector<2x32xf32>
    %384 = arith.subf %381, %382 : vector<2x32xf32>
    %385 = arith.addf %383, %384 : vector<2x32xf32>
    %386 = arith.mulf %358, %382 : vector<2x32xf32>
    %387 = arith.subf %380, %382 : vector<2x32xf32>
    %388 = arith.addf %386, %387 : vector<2x32xf32>
    %389 = arith.mulf %385, %345 : vector<2x32xf32>
    %390 = arith.mulf %388, %361 : vector<2x32xf32>
    %391 = arith.addf %389, %390 : vector<2x32xf32>
    %392 = math.tanh %391 : vector<2x32xf32>
    %393 = arith.mulf %357, %392 : vector<2x32xf32>
    %394 = tpu.concatenate %71, %117, %163, %209, %255, %301, %347, %393 in 0 : vector<2x32xf32>, vector<2x32xf32>, vector<2x32xf32>, vector<2x32xf32>, vector<2x32xf32>, vector<2x32xf32>, vector<2x32xf32>, vector<2x32xf32> -> vector<16x32xf32>
    %395 = arith.addf %8, %394 : vector<16x32xf32>
    %c0_57 = arith.constant 0 : index
    %c0_58 = arith.constant 0 : index
    %396 = vector.load %arg5[%c0_57, %c0_58] : memref<1x32xf32, #tpu.memory_space<vmem>>, vector<1x32xf32>
    %c0_59 = arith.constant 0 : index
    %c0_60 = arith.constant 0 : index
    %397 = vector.load %arg6[%c0_59, %c0_60] : memref<1x32xf32, #tpu.memory_space<vmem>>, vector<1x32xf32>
    %cst_61 = arith.constant dense<0.000000e+00> : vector<16xf32>
    %398 = vector.multi_reduction <add>, %395, %cst_61 [1] : vector<16x32xf32> to vector<16xf32>
    %399 = vector.shape_cast %398 : vector<16xf32> to vector<16x1xf32>
    %cst_62 = arith.constant 3.200000e+01 : f32
    %400 = vector.broadcast %cst_62 : f32 to vector<16x1xf32>
    %401 = arith.divf %399, %400 : vector<16x1xf32>
    %402 = vector.broadcast %401 : vector<16x1xf32> to vector<16x32xf32>
    %403 = arith.subf %395, %402 : vector<16x32xf32>
    %404 = arith.mulf %403, %403 : vector<16x32xf32>
    %cst_63 = arith.constant dense<0.000000e+00> : vector<16xf32>
    %405 = vector.multi_reduction <add>, %404, %cst_63 [1] : vector<16x32xf32> to vector<16xf32>
    %406 = vector.shape_cast %405 : vector<16xf32> to vector<16x1xf32>
    %cst_64 = arith.constant 0.0322580636 : f32
    %407 = vector.broadcast %cst_64 : f32 to vector<16x1xf32>
    %408 = arith.mulf %406, %407 : vector<16x1xf32>
    %409 = vector.broadcast %401 : vector<16x1xf32> to vector<16x32xf32>
    %410 = arith.subf %395, %409 : vector<16x32xf32>
    %411 = vector.broadcast %396 : vector<1x32xf32> to vector<16x32xf32>
    %412 = arith.mulf %411, %410 : vector<16x32xf32>
    %413 = math.sqrt %408 : vector<16x1xf32>
    %cst_65 = arith.constant 9.99999997E-7 : f32
    %414 = vector.broadcast %cst_65 : f32 to vector<16x1xf32>
    %415 = arith.addf %413, %414 : vector<16x1xf32>
    %416 = vector.broadcast %415 : vector<16x1xf32> to vector<16x32xf32>
    %417 = arith.divf %412, %416 : vector<16x32xf32>
    %418 = vector.broadcast %397 : vector<1x32xf32> to vector<16x32xf32>
    %419 = arith.addf %417, %418 : vector<16x32xf32>
    %420 = arith.truncf %419 : vector<16x32xf32> to vector<16x32xbf16>
    %c0_66 = arith.constant 0 : index
    %c0_67 = arith.constant 0 : index
    %421 = vector.load %arg7[%c0_66, %c0_67] : memref<32x64xbf16, #tpu.memory_space<vmem>>, vector<32x64xbf16>
    %cst_68 = arith.constant dense<0.000000e+00> : vector<16x64xf32>
    %422 = tpu.matmul %420, %421, %cst_68 {dimension_numbers = #tpu.dot_dimension_numbers<[1], [0], [0], [1], [0, 0, 1, 1], [], []>} : vector<16x32xbf16>, vector<32x64xbf16>, vector<16x64xf32> -> vector<16x64xf32>
    %c0_69 = arith.constant 0 : index
    %c0_70 = arith.constant 0 : index
    %423 = vector.load %arg8[%c0_69, %c0_70] : memref<1x64xf32, #tpu.memory_space<vmem>>, vector<1x64xf32>
    %424 = vector.broadcast %423 : vector<1x64xf32> to vector<16x64xf32>
    %425 = arith.addf %422, %424 : vector<16x64xf32>
    %cst_71 = arith.constant 0.000000e+00 : f32
    %426 = vector.broadcast %cst_71 : f32 to vector<16x64xf32>
    %427 = arith.maximumf %425, %426 : vector<16x64xf32>
    %428 = arith.truncf %427 : vector<16x64xf32> to vector<16x64xbf16>
    %c0_72 = arith.constant 0 : index
    %c0_73 = arith.constant 0 : index
    %429 = vector.load %arg9[%c0_72, %c0_73] : memref<64x32xbf16, #tpu.memory_space<vmem>>, vector<64x32xbf16>
    %cst_74 = arith.constant dense<0.000000e+00> : vector<16x32xf32>
    %430 = tpu.matmul %428, %429, %cst_74 {dimension_numbers = #tpu.dot_dimension_numbers<[1], [0], [0], [1], [0, 0, 1, 1], [], []>} : vector<16x64xbf16>, vector<64x32xbf16>, vector<16x32xf32> -> vector<16x32xf32>
    %c0_75 = arith.constant 0 : index
    %c0_76 = arith.constant 0 : index
    %431 = vector.load %arg10[%c0_75, %c0_76] : memref<1x32xf32, #tpu.memory_space<vmem>>, vector<1x32xf32>
    %432 = vector.broadcast %431 : vector<1x32xf32> to vector<16x32xf32>
    %433 = arith.addf %430, %432 : vector<16x32xf32>
    %434 = arith.addf %419, %433 : vector<16x32xf32>
    %c0_77 = arith.constant 0 : index
    %c0_78 = arith.constant 0 : index
    %435 = vector.load %arg11[%c0_77, %c0_78] : memref<1x32xf32, #tpu.memory_space<vmem>>, vector<1x32xf32>
    %c0_79 = arith.constant 0 : index
    %c0_80 = arith.constant 0 : index
    %436 = vector.load %arg12[%c0_79, %c0_80] : memref<1x32xf32, #tpu.memory_space<vmem>>, vector<1x32xf32>
    %cst_81 = arith.constant dense<0.000000e+00> : vector<16xf32>
    %437 = vector.multi_reduction <add>, %434, %cst_81 [1] : vector<16x32xf32> to vector<16xf32>
    %438 = vector.shape_cast %437 : vector<16xf32> to vector<16x1xf32>
    %cst_82 = arith.constant 3.200000e+01 : f32
    %439 = vector.broadcast %cst_82 : f32 to vector<16x1xf32>
    %440 = arith.divf %438, %439 : vector<16x1xf32>
    %441 = vector.broadcast %440 : vector<16x1xf32> to vector<16x32xf32>
    %442 = arith.subf %434, %441 : vector<16x32xf32>
    %443 = arith.mulf %442, %442 : vector<16x32xf32>
    %cst_83 = arith.constant dense<0.000000e+00> : vector<16xf32>
    %444 = vector.multi_reduction <add>, %443, %cst_83 [1] : vector<16x32xf32> to vector<16xf32>
    %445 = vector.shape_cast %444 : vector<16xf32> to vector<16x1xf32>
    %cst_84 = arith.constant 0.0322580636 : f32
    %446 = vector.broadcast %cst_84 : f32 to vector<16x1xf32>
    %447 = arith.mulf %445, %446 : vector<16x1xf32>
    %448 = vector.broadcast %440 : vector<16x1xf32> to vector<16x32xf32>
    %449 = arith.subf %434, %448 : vector<16x32xf32>
    %450 = vector.broadcast %435 : vector<1x32xf32> to vector<16x32xf32>
    %451 = arith.mulf %450, %449 : vector<16x32xf32>
    %452 = math.sqrt %447 : vector<16x1xf32>
    %cst_85 = arith.constant 9.99999997E-7 : f32
    %453 = vector.broadcast %cst_85 : f32 to vector<16x1xf32>
    %454 = arith.addf %452, %453 : vector<16x1xf32>
    %455 = vector.broadcast %454 : vector<16x1xf32> to vector<16x32xf32>
    %456 = arith.divf %451, %455 : vector<16x32xf32>
    %457 = vector.broadcast %436 : vector<1x32xf32> to vector<16x32xf32>
    %458 = arith.addf %456, %457 : vector<16x32xf32>
    %c0_86 = arith.constant 0 : index
    %c0_87 = arith.constant 0 : index
    %459 = vector.load %arg13[%c0_86, %c0_87] : memref<16x32xf32, #tpu.memory_space<vmem>>, vector<16x32xf32>
    tpu.vector_store %arg13[%c0_86, %c0_87], %458 {strides = array<i32>} : memref<16x32xf32, #tpu.memory_space<vmem>>, vector<16x32xf32>,
    return
  }
  func.func @transform_0(%arg0: i32) -> (i32, i32) {
    %c0_i32 = arith.constant 0 : i32
    %c0_i32_0 = arith.constant 0 : i32
    %c0_i32_1 = arith.constant 0 : i32
    return %c0_i32, %c0_i32_0 : i32, i32
  }
  func.func @transform_1(%arg0: i32) -> (i32, i32) {
    %c0_i32 = arith.constant 0 : i32
    %c0_i32_0 = arith.constant 0 : i32
    %c0_i32_1 = arith.constant 0 : i32
    return %c0_i32, %c0_i32_0 : i32, i32
  }
  func.func @transform_2(%arg0: i32) -> (i32, i32) {
    %c0_i32 = arith.constant 0 : i32
    %c0_i32_0 = arith.constant 0 : i32
    %c0_i32_1 = arith.constant 0 : i32
    return %c0_i32, %c0_i32_0 : i32, i32
  }
  func.func @transform_3(%arg0: i32) -> (i32, i32) {
    %c0_i32 = arith.constant 0 : i32
    %c0_i32_0 = arith.constant 0 : i32
    %c0_i32_1 = arith.constant 0 : i32
    return %c0_i32, %c0_i32_0 : i32, i32
  }
  func.func @transform_4(%arg0: i32) -> (i32, i32) {
    %c0_i32 = arith.constant 0 : i32
    %c0_i32_0 = arith.constant 0 : i32
    %c0_i32_1 = arith.constant 0 : i32
    return %c0_i32, %c0_i32_0 : i32, i32
  }
  func.func @transform_5(%arg0: i32) -> (i32, i32) {
    %c0_i32 = arith.constant 0 : i32
    %c0_i32_0 = arith.constant 0 : i32
    %c0_i32_1 = arith.constant 0 : i32
    return %c0_i32, %c0_i32_0 : i32, i32
  }
  func.func @transform_6(%arg0: i32) -> (i32, i32) {
    %c0_i32 = arith.constant 0 : i32
    %c0_i32_0 = arith.constant 0 : i32
    %c0_i32_1 = arith.constant 0 : i32
    return %c0_i32, %c0_i32_0 : i32, i32
  }
  func.func @transform_7(%arg0: i32) -> (i32, i32) {
    %c0_i32 = arith.constant 0 : i32
    %c0_i32_0 = arith.constant 0 : i32
    %c0_i32_1 = arith.constant 0 : i32
    return %c0_i32, %c0_i32_0 : i32, i32
  }
  func.func @transform_8(%arg0: i32) -> (i32, i32) {
    %c0_i32 = arith.constant 0 : i32
    %c0_i32_0 = arith.constant 0 : i32
    %c0_i32_1 = arith.constant 0 : i32
    return %c0_i32, %c0_i32_0 : i32, i32
  }
  func.func @transform_9(%arg0: i32) -> (i32, i32) {
    %c0_i32 = arith.constant 0 : i32
    %c0_i32_0 = arith.constant 0 : i32
    %c0_i32_1 = arith.constant 0 : i32
    return %c0_i32, %c0_i32_0 : i32, i32
  }
  func.func @transform_10(%arg0: i32) -> (i32, i32) {
    %c0_i32 = arith.constant 0 : i32
    %c0_i32_0 = arith.constant 0 : i32
    %c0_i32_1 = arith.constant 0 : i32
    return %c0_i32, %c0_i32_0 : i32, i32
  }
  func.func @transform_11(%arg0: i32) -> (i32, i32) {
    %c0_i32 = arith.constant 0 : i32
    %c0_i32_0 = arith.constant 0 : i32
    %c0_i32_1 = arith.constant 0 : i32
    return %c0_i32, %c0_i32_0 : i32, i32
  }
  func.func @transform_12(%arg0: i32) -> (i32, i32) {
    %c0_i32 = arith.constant 0 : i32
    %c0_i32_0 = arith.constant 0 : i32
    %c0_i32_1 = arith.constant 0 : i32
    return %c0_i32, %c0_i32_0 : i32, i32
  }
}

</mosaic_0001>

<bundles_post_ra>
// kernel: ordered_transformer_encoder_layer.1
= control target key start
LH: loop header
LB: loop body
LE: loop exit
PB: predicated region body
PF: predicated region fallthrough
CT: control target
= control target key end

     0   :  { %17 = vsyncpa [#allocation3], 0  ;;  %s2812_s0 = inlined_call_operand.vmem [shape: f32[16,32], index: 0, kind: input, shape index: {}]   ;;  %s2813_s1 = inlined_call_operand.vmem [shape: bf16[32,136], index: 1, kind: input, shape index: {}]   ;;  %s2814_s2 = inlined_call_operand.hbm [shape: bf16[32,136], index: 2, kind: input, shape index: {}]   ;;  %s2815_s3 = inlined_call_operand.hbm [shape: f32[1,136], index: 3, kind: input, shape index: {}]   ;;  %s2816_s4 = inlined_call_operand.hbm [shape: f32[1,32], index: 4, kind: input, shape index: {}]   ;;  %s2817_s5 = inlined_call_operand.hbm [shape: f32[1,32], index: 5, kind: input, shape index: {}]   ;;  %s2818_s6 = inlined_call_operand.hbm [shape: bf16[32,64], index: 6, kind: input, shape index: {}]   ;;  %s2819_s7 = inlined_call_operand.hbm [shape: f32[1,64], index: 7, kind: input, shape index: {}]   ;;  %s2820_s8 = inlined_call_operand.vmem [shape: bf16[64,32], index: 8, kind: input, shape index: {}]   ;;  %s2821_s9 = inlined_call_operand.vmem [shape: f32[1,32], index: 9, kind: input, shape index: {}]   ;;  %s2822_s10 = inlined_call_operand.vmem [shape: f32[1,32], index: 10, kind: input, shape index: {}]   ;;  %s2823_s11 = inlined_call_operand.vmem [shape: f32[1,32], index: 11, kind: input, shape index: {}]   ;;  %s2824_s12 = inlined_call_operand.hbm [shape: f32[16,32], index: 12, kind: output, shape index: {}]  }
   0x1   :  { %18 = vsyncpa [#allocation6], 0 }
   0x2   :  { %19 = vsyncpa [#allocation9], 0 }
   0x3   :  { %20 = vsyncpa [#allocation12], 0 }
   0x4   :  { %21 = vsyncpa [#allocation4], 0  ;;  %s2361_s21 = smov [#allocation5]   ;;  %s2362_s23 = smov [#allocation8]  }
   0x5   :  { %s44_s22 = sshll.u32 %s2361_s21, 4  ;;  %s64_s24 = sshll.u32 %s2362_s23, 4  ;;  %s45_s22 = int_to_ptr.vmem [resolvable:$true] %s44_s22  ;;  %s65_s24 = int_to_ptr.vmem [resolvable:$true] %s64_s24 }
   0x6   :  { %s2219_s25 = scalar_lea.vmem %s45_s22, 32  ;;  %p2224_p1 = scmp.lt.s32.totalorder %s45_s22, %s45_s22 }
   0x7   :  { %p2220_p0 = scmp.ne.s32.totalorder %s45_s22, %s2219_s25  ;;  %p2225_p2 = scmp.lt.s32.totalorder %s2219_s25, %s2219_s25 }
   0x9   :  { %p2226_p3 = por %p2225_p2, %p2224_p1 }
   0xb   :  { %p2227_p4 = pnand %p2226_p3, %p2220_p0 }
   0xd   :  { %2230 = shalt.err (!%p2227_p4)
}
   0xe   :  { %47 = dma.hbm_to_vmem [thread:$0]  %s2815_s3, 32, %s45_s22, [#allocation6]  }
   0xf   :  { %s2239_s28 = scalar_lea.vmem %s65_s24, 16  ;;  %s2243_s29 = scalar_lea.vmem %s65_s24, 32 }
  0x10   :  { %p2240_p5 = scmp.ne.s32.totalorder %s65_s24, %s2239_s28  ;;  %p2244_p6 = scmp.lt.s32.totalorder %s65_s24, %s65_s24 }
  0x11   :  { %p2245_p7 = scmp.lt.s32.totalorder %s2243_s29, %s2239_s28 }
  0x13   :  { %p2246_p8 = por %p2245_p7, %p2244_p6 }
  0x15   :  { %p2247_p9 = pnand %p2246_p8, %p2240_p5 }
  0x17   :  { %2250 = shalt.err (!%p2247_p9)
}
  0x18   :  { %67 = dma.hbm_to_vmem [thread:$0]  %s2817_s5, 16, %s65_s24, [#allocation9]  }
  0x19   :  { %s2363_s14 = smov [#allocation2]  }
  0x1a   :  { %s31_s15 = sshll.u32 %s2363_s14, 4  ;;  %s32_s15 = int_to_ptr.vmem [resolvable:$true] %s31_s15 }
  0x1b   :  { %s2259_s16 = scalar_lea.vmem %s32_s15, 512  ;;  %p2264_p11 = scmp.lt.s32.totalorder %s32_s15, %s32_s15 }
  0x1c   :  { %p2260_p10 = scmp.ne.s32.totalorder %s32_s15, %s2259_s16  ;;  %p2265_p12 = scmp.lt.s32.totalorder %s2259_s16, %s2259_s16 }
  0x1e   :  { %p2266_p13 = por %p2265_p12, %p2264_p11 }
  0x20   :  { %p2267_p0 = pnand %p2266_p13, %p2260_p10 }
  0x22   :  { %2270 = shalt.err (!%p2267_p0)
}
  0x23   :  { %s2364_s3 = smov 128   ;;  %s2365_s17 = smov 8  }
  0x24   :  { %37 = dma.hbm_to_vmem [thread:$0]  %s2814_s2, 512, %s32_s15, [#allocation3], %s2364_s3, %s2364_s3, %s2365_s17  }
  0x25   :  { %s2366_s5 = smov [#allocation7]   ;;  %s2367_s21 = smov [#allocation10]  }
  0x26   :  { %s54_s20 = sshll.u32 %s2366_s5, 4  ;;  %s73_s22 = sshll.u32 %s2367_s21, 4  ;;  %s55_s20 = int_to_ptr.vmem [resolvable:$true] %s54_s20  ;;  %s74_s22 = int_to_ptr.vmem [resolvable:$true] %s73_s22 }
  0x27   :  { %s2279_s23 = scalar_lea.vmem %s55_s20, 16  ;;  %s2283_s24 = scalar_lea.vmem %s55_s20, 32 }
  0x28   :  { %p2280_p1 = scmp.ne.s32.totalorder %s55_s20, %s2279_s23  ;;  %p2284_p2 = scmp.lt.s32.totalorder %s55_s20, %s55_s20 }
  0x29   :  { %p2285_p3 = scmp.lt.s32.totalorder %s2283_s24, %s2279_s23 }
  0x2b   :  { %p2286_p4 = por %p2285_p3, %p2284_p2 }
  0x2d   :  { %p2287_p5 = pnand %p2286_p4, %p2280_p1 }
  0x2f   :  { %2290 = shalt.err (!%p2287_p5)
}
  0x30   :  { %57 = dma.hbm_to_vmem [thread:$0]  %s2816_s4, 16, %s55_s20, [#allocation6]  }
  0x31   :  { %s2299_s27 = scalar_lea.vmem %s74_s22, 256  ;;  %p2304_p7 = scmp.lt.s32.totalorder %s74_s22, %s74_s22 }
  0x32   :  { %p2300_p6 = scmp.ne.s32.totalorder %s74_s22, %s2299_s27  ;;  %p2305_p8 = scmp.lt.s32.totalorder %s2299_s27, %s2299_s27 }
  0x34   :  { %p2306_p9 = por %p2305_p8, %p2304_p7 }
  0x36   :  { %p2307_p10 = pnand %p2306_p9, %p2300_p6 }
  0x38   :  { %2310 = shalt.err (!%p2307_p10)
}
  0x39   :  { %s2368_s2 = smov 64   ;;  %s2369_s28 = smov 4  }
  0x3a   :  { %79 = dma.hbm_to_vmem [thread:$0]  %s2818_s6, 256, %s74_s22, [#allocation9], %s2368_s2, %s2368_s2, %s2369_s28  }
  0x3b   :  { %s2370_s13 = smov [#allocation11]  }
  0x3c   :  { %s86_s14 = sshll.u32 %s2370_s13, 4  ;;  %s87_s14 = int_to_ptr.vmem [resolvable:$true] %s86_s14 }
  0x3d   :  { %s2319_s4 = scalar_lea.vmem %s87_s14, 16  ;;  %s2323_s15 = scalar_lea.vmem %s87_s14, 32 }
  0x3e   :  { %p2320_p11 = scmp.ne.s32.totalorder %s87_s14, %s2319_s4  ;;  %p2324_p12 = scmp.lt.s32.totalorder %s87_s14, %s87_s14 }
  0x3f   :  { %p2325_p13 = scmp.lt.s32.totalorder %s2323_s15, %s2319_s4 }
  0x41   :  { %p2326_p0 = por %p2325_p13, %p2324_p12 }
  0x43   :  { %p2327_p1 = pnand %p2326_p0, %p2320_p11 }
  0x45   :  { %2330 = shalt.err (!%p2327_p1)
}
  0x46   :  { %89 = dma.hbm_to_vmem [thread:$0]  %s2819_s7, 16, %s87_s14, [#allocation12]  }
  0x47   :  { %2351 = dma.done.wait [#allocation3], 512  }
  0x48   :  { %2352 = vsyncadd [#allocation3], 4294966784 }
  0x49   :  { %2353 = dma.done.wait [#allocation6], 48  }
  0x4a   :  { %2354 = vsyncadd [#allocation6], 4294967248 }
  0x4b   :  { %2355 = dma.done.wait [#allocation9], 272  }
  0x4c   :  { %2356 = vsyncadd [#allocation9], 4294967024 }
  0x4d   :  { %2357 = dma.done.wait [#allocation12], 16  }
  0x4e   :  { %2358 = vsyncadd [#allocation12], 4294967280  ;;  %v2371_v0 = vmov 0   ;;  %v2372_v1 = vmov 0.0   ;;  %v2076_v2 = vld [vmem:[%s2813_s1 + $0x14] ss:$8 sps:$4 sm:$0xff]   ;;  %v117_v13 = vlaneseq }
  0x4f   :  { %205 = vmatprep.mubr.bf16.mxu1 %v2371_v0  ;;  %1991 = vmatprep.subr.bf16.mxu0 %v2372_v1  ;;  %v2078_v3 = vld [vmem:[%s2813_s1 + $0x10] ss:$8 sps:$4 sm:$0xff]   ;;  %v2079_v4 = vld [vmem:[%s2813_s1 + $0x4] ss:$8 sps:$4 sm:$0xff]   ;;  %v2081_v5 = vld [vmem:[%s2813_s1] ss:$8 sps:$4 sm:$0xff]  }
  0x50   :  { %185 = vmatprep.subr.bf16.mxu1 %v2076_v2  ;;  %v126_v6 = vld [vmem:[%s2812_s0] sm:$0xff]  ;;  %v127_v7 = vld [vmem:[%s2812_s0 + $0x8] sm:$0xff]  ;;  %v2486_v8 = vld [vmem:[#allocation2 + $0x14] ss:$8 sps:$4 sm:$0xff]   ;;  %vm169_vm0 = vcmask 261120   ;;  %v118_v14 = vshrl.u32 %v117_v13, 7 }
  0x51   :  { %186 = vmatpush1.bf16.msra.mxu1 %v2078_v3  ;;  %v2488_v9 = vld [vmem:[#allocation2 + $0x10] ss:$8 sps:$4 sm:$0xff]   ;;  %v136_v10 = vpack.c.bf16 %v127_v7, %v126_v6  ;;  %v2490_v11 = vld [vmem:[#allocation2 + $0x4] ss:$8 sps:$4 sm:$0xff]   ;;  %v2495_v12 = vld [vmem:[#allocation2] ss:$8 sps:$4 sm:$0xff]  }
  0x52   :  { %187 = vmatprep.subr.bf16.mxu1 %v2079_v4  ;;  %v141_v15 = vsub.s32 0, %v118_v14  ;;  %v137_v16 = vld [vmem:[#allocation5] sm:$0x3]  ;;  %v145_v18 = vsub.s32 1, %v118_v14  ;;  %s2373_s1 = smov 124   ;;  %vm294_vm1 = vcmask 1041408  }
  0x53   :  { %vm296_vm2 = vcmask 27648   ;;  %v120_v36 = vand.u32 127, %v117_v13  ;;  %v121_v37 = vmul.u32 8, %v118_v14  ;;  %vm2374_vm4 = vmmov 0   ;;  %s2375_s28 = smov 32   ;;  %s2376_s29 = smov 96  }
  0x54   :  { %v142_v20 = vrot.slane %v137_v16, %v141_v15  ;;  %v146_v22 = vrot.slane %v137_v16, %v145_v18  ;;  %1993 = vmatprep.mubr.msk.bf16.mxu0 %vm2374_vm4, %v2372_v1  ;;  %vm307_vm5 = vcmask 31744   ;;  %vm1615_vm6 = vcmask 1043456   ;;  %s2377_s23 = smov [#allocation13]  }
  0x55   :  { %188 = vmatpush1.bf16.msra.mxu1 %v2081_v5  ;;  %vm122_vm3 = vcmp.ge.s32.totalorder %v120_v36, %v121_v37  ;;  %vm1617_vm7 = vcmask 1045504   ;;  %vm1793_vm12 = vcmask 523264   ;;  %s1905_s24 = sshll.u32 %s2377_s23, 4  ;;  %s1906_s24 = int_to_ptr.vmem [resolvable:$true] %s1905_s24 }
  0x56   :  { %251 = vmatprep.subr.bf16.mxu1 %v2486_v8  ;;  %v1920_v38 = vsel %vm122_vm3, 1.0, %v2372_v1  ;;  %p2336_p3 = scmp.lt.s32.totalorder %s1906_s24, %s1906_s24 }
  0x57   :  { %v125_v39 = vpack.c.bf16 %v1920_v38, %v1920_v38 }
  0x58   :  { %1925 = vmatmul.mubr.msk.bf16.vlgmr.msra.gmra.mxu1 %vm169_vm0, %v136_v10 }
  0x59   :  { %252 = vmatpush1.bf16.msra.mxu1 %v2488_v9  ;;  %271 = vmatprep.mubr.bf16.mxu1 %v2371_v0  ;;  %v2519_v40 = vsel %vm294_vm1, %v125_v39, 0 }
  0x5a   :  { %253 = vmatprep.subr.bf16.mxu1 %v2490_v11  ;;  %1992 = vmatpush3.bf16.msra.mxu0 %v2519_v40 }
  0x5b   :  { %1997 = vmatprep.subr.bf16.mxu0 %v2372_v1 }
  0x5d   :  { %254 = vmatpush1.bf16.msra.mxu1 %v2495_v12 }
  0x5e   :  { %418 = vmatprep.subr.bf16.mxu1 %v2486_v8 }
  0x60   :  { %272 = vmatmul.mubr.bf16.vlgmr.msra.gmra.mxu1 %v2371_v0 }
  0x61   :  { %419 = vmatpush1.bf16.msra.mxu1 %v2488_v9  ;;  %438 = vmatprep.mubr.bf16.mxu1 %v2371_v0 }
  0x62   :  { %420 = vmatprep.subr.bf16.mxu1 %v2490_v11 }
  0x65   :  { %421 = vmatpush1.bf16.msra.mxu1 %v2495_v12 }
  0x66   :  { %591 = vmatprep.subr.bf16.mxu1 %v2486_v8 }
 0x118   :  { %v207_v17 = vpop.f32.mrf.mxu1 }
 0x119   :  { %v2531_v48 = vadd.f32 %v207_v17, %v142_v20 }
 0x11a   :  { %v209_v19 = vpop.f32.mrf.mxu1 }
 0x11b   :  { %v2511_v27 = vadd.f32 %v209_v19, %v146_v22 }
 0x11c   :  { %v211_v21 = vpop.f32.mrf.mxu1 }
 0x11d   :  { %v2507_v23 = vadd.f32 %v211_v21, %v142_v20 }
 0x11e   :  { %v213_v24 = vpop.f32.mrf.mxu1 }
 0x11f   :  { %v2509_v25 = vadd.f32 %v213_v24, %v146_v22 }
 0x120   :  { %v273_v26 = vpop.f32.mrf.mxu1 }
 0x121   :  { %v280_v49 = vadd.f32 %v273_v26, %v2531_v48 }
 0x122   :  { %v275_v28 = vpop.f32.mrf.mxu1 }
 0x123   :  { %v281_v29 = vadd.f32 %v275_v28, %v2511_v27  ;;  %v1930_v2 = vmul.f32 -1.442695, %v280_v49 }
 0x124   :  { %v277_v30 = vpop.f32.mrf.mxu1 }
 0x125   :  { %v290_v31 = vrot.slane %v281_v29, 6 }
 0x126   :  { %v278_v32 = vpop.f32.mrf.mxu1 }
 0x127   :  { %291 = vrot.lane.b32.xlu0 %v290_v31, %s2373_s1 }
 0x199   :  { %v292_v33 = vpop.permute.xlu0 %291 }
 0x19a   :  { %v295_v34 = vsel %vm294_vm1, %v281_v29, %v292_v33 }
 0x19b   :  { %v297_v35 = vsel %vm296_vm2, %v295_v34, -inf }
 0x19c   :  { %298 = vmax.xlane.f32.xlu0 %v297_v35 }
 0x225   :  { %v299_v41 = vpop.xlane.xlu0 %298 }
 0x226   :  { %v300_v42 = vsub.f32 %v295_v34, %v299_v41 }
 0x228   :  { %v301_v43 = vmul.f32 1.442695, %v300_v42 }
 0x22a   :  { %2094 = vpow2.f32 %v301_v43 }
 0x237   :  { %v2095_v44 = vpop.eup %2094 }
 0x238   :  { %v303_v45 = vsel %vm296_vm2, %v2095_v44, 0.0  ;;  %v306_v46 = vpack.c.bf16 %v2095_v44, %v2095_v44 }
 0x239   :  { %304 = vadd.xlane.f32.xlu1 %v303_v45 }
 0x23a   :  { %1994 = vmatmul.mubr.msk.bf16.vlgmr.msra.gmra.mxu0 %vm307_vm5, %v306_v46 }
 0x23b   :  { %1998 = vmatpush3.bf16.msra.mxu0 %v2519_v40  ;;  %1999 = vmatprep.mubr.msk.bf16.mxu0 %vm2374_vm4, %v2372_v1 }
 0x23c   :  { %2003 = vmatprep.subr.bf16.mxu0 %v2372_v1 }
 0x2c2   :  { %v305_v47 = vpop.xlane.xlu1 %304 }
 0x2c3   :  { %2096 = vrcp.f32 %v305_v47 }
 0x2c4   :  { %2098 = vtanh.f32 %v280_v49 }
 0x2c5   :  { %2100 = vpow2.f32 %v1930_v2 }
 0x2d0   :  { %v2097_v50 = vpop.eup %2096 }
 0x2d1   :  { %v2099_v61 = vpop.eup %2098 }
 0x2d2   :  { %v2101_v3 = vpop.eup %2100 }
 0x2d3   :  { %v285_v4 = vadd.f32 1.0, %v2101_v3 }
 0x2d5   :  { %2102 = vrcp.f32 %v285_v4 }
 0x2e2   :  { %v2103_v6 = vpop.eup %2102 }
 0x2fa   :  { %v348_v51 = vpop.f32.mrf.mxu0 }
 0x2fb   :  { %v355_v52 = vmul.f32 %v2097_v50, %v348_v51 }
 0x2fc   :  { %v1995_v53 = vpop.f32.mrf.mxu0 }
 0x2fd   :  { %v356_v54 = vsub.f32 1.0, %v355_v52  ;;  %v358_v55 = vrot.slane %v355_v52, 2 }
 0x2fe   :  { %v351_v56 = vpop.f32.mrf.mxu0 }
 0x2ff   :  { %v360_v57 = vmul.f32 %v358_v55, %v356_v54 }
 0x300   :  { %v1996_v58 = vpop.f32.mrf.mxu0 }
 0x301   :  { %375 = vrot.lane.b32.xlu1 %v360_v57, %s2368_s2  ;;  %v379_v59 = vsub.f32 %v356_v54, %v360_v57  ;;  %v366_v60 = vrot.slane %v360_v57, 6 }
 0x303   :  { %v368_v62 = vsub.f32 %v355_v52, %v366_v60 }
 0x305   :  { %381 = vrot.lane.b32.xlu1 %v379_v59, %s2368_s2  ;;  %v370_v63 = vrot.slane %v368_v62, 2 }
 0x309   :  { %387 = vrot.lane.b32.xlu1 %v2099_v61, %s2375_s28 }
 0x30d   :  { %362 = vrot.lane.b32.xlu1 %v360_v57, %s2376_s29 }
 0x311   :  { %371 = vrot.lane.b32.xlu1 %v370_v63, %s2376_s29 }
 0x373   :  { %v376_v5 = vpop.permute.xlu1 %375 }
 0x374   :  { %v378_v10 = vmul.f32 %v2103_v6, %v376_v5 }
 0x377   :  { %v382_v7 = vpop.permute.xlu1 %381 }
 0x378   :  { %v384_v13 = vadd.f32 %v382_v7, %v378_v10 }
 0x37b   :  { %v388_v14 = vpop.permute.xlu1 %387 }
 0x37c   :  { %v390_v15 = vmul.f32 %v388_v14, %v384_v13 }
 0x37e   :  { %392 = vrot.lane.b32.xlu0 %v390_v15, %s2375_s28 }
 0x37f   :  { %v363_v16 = vpop.permute.xlu1 %362 }
 0x380   :  { %v365_v18 = vmul.f32 %v2103_v6, %v363_v16 }
 0x383   :  { %v372_v17 = vpop.permute.xlu1 %371 }
 0x384   :  { %v374_v19 = vadd.f32 %v372_v17, %v365_v18 }
 0x386   :  { %v385_v20 = vmul.f32 0.0, %v374_v19 }
 0x3f0   :  { %v393_v21 = vpop.permute.xlu0 %392 }
 0x3f1   :  { %v2540_v22 = vadd.f32 %v393_v21, %v385_v20 }
 0x3f3   :  { %2104 = vtanh.f32 %v2540_v22  ;;  %v554_v21 = vrot.slane %v2540_v22, 6 }
 0x400   :  { %v2105_v24 = vpop.eup %2104 }
 0x401   :  { %398 = vrot.lane.b32.xlu1 %v2105_v24, %s2375_s28 }
 0x473   :  { %v399_v26 = vpop.permute.xlu1 %398 }
 0x474   :  { %v2544_v28 = vmul.f32 %v2103_v6, %v399_v26 }
 0x476   :  { %v402_v29 = vpack.c.bf16 %v2544_v28, %v2544_v28 }
 0x478   :  { %1932 = vmatmul.mubr.msk.bf16.vlgmr.msra.gmra.mxu1 %vm169_vm0, %v402_v29 }
 0x479   :  { %592 = vmatpush1.bf16.msra.mxu1 %v2488_v9  ;;  %611 = vmatprep.mubr.bf16.mxu1 %v2371_v0 }
 0x47a   :  { %593 = vmatprep.subr.bf16.mxu1 %v2490_v11 }
 0x47d   :  { %594 = vmatpush1.bf16.msra.mxu1 %v2495_v12 }
 0x47e   :  { %767 = vmatprep.subr.bf16.mxu1 %v2486_v8 }
 0x538   :  { %v440_v30 = vpop.f32.mrf.mxu1 }
 0x539   :  { %v449_v49 = vrot.slane %v440_v30, 6 }
 0x53a   :  { %v442_v31 = vpop.f32.mrf.mxu1 }
 0x53b   :  { %v450_v32 = vrot.slane %v442_v31, 6  ;;  %v453_v50 = vadd.f32 %v449_v49, %v2531_v48 }
 0x53c   :  { %v444_v33 = vpop.f32.mrf.mxu1 }
 0x53d   :  { %v454_v34 = vadd.f32 %v450_v32, %v2511_v27  ;;  %v1933_v3 = vmul.f32 -1.442695, %v453_v50 }
 0x53e   :  { %v445_v35 = vpop.f32.mrf.mxu1 }
 0x53f   :  { %465 = vrot.lane.b32.xlu1 %v454_v34, %s2373_s1  ;;  %v463_v36 = vrot.slane %v454_v34, 2 }
 0x5b1   :  { %v466_v37 = vpop.permute.xlu1 %465 }
 0x5b2   :  { %v468_v38 = vsel %vm294_vm1, %v463_v36, %v466_v37 }
 0x5b3   :  { %v469_v39 = vsel %vm296_vm2, %v468_v38, -inf }
 0x5b4   :  { %470 = vmax.xlane.f32.xlu1 %v469_v39 }
 0x63d   :  { %v471_v41 = vpop.xlane.xlu1 %470 }
 0x63e   :  { %v472_v42 = vsub.f32 %v468_v38, %v471_v41 }
 0x640   :  { %v473_v43 = vmul.f32 1.442695, %v472_v42 }
 0x642   :  { %2106 = vpow2.f32 %v473_v43 }
 0x64f   :  { %v2107_v44 = vpop.eup %2106 }
 0x650   :  { %v475_v45 = vsel %vm296_vm2, %v2107_v44, 0.0  ;;  %v478_v46 = vpack.c.bf16 %v2107_v44, %v2107_v44 }
 0x651   :  { %476 = vadd.xlane.f32.xlu0 %v475_v45 }
 0x652   :  { %2000 = vmatmul.mubr.msk.bf16.vlgmr.msra.gmra.mxu0 %vm307_vm5, %v478_v46 }
 0x653   :  { %2004 = vmatpush3.bf16.msra.mxu0 %v2519_v40  ;;  %2005 = vmatprep.mubr.msk.bf16.mxu0 %vm2374_vm4, %v2372_v1 }
 0x654   :  { %2009 = vmatprep.subr.bf16.mxu0 %v2372_v1 }
 0x6da   :  { %v477_v47 = vpop.xlane.xlu0 %476 }
 0x6db   :  { %2108 = vrcp.f32 %v477_v47 }
 0x6dc   :  { %2110 = vtanh.f32 %v453_v50 }
 0x6dd   :  { %2112 = vpow2.f32 %v1933_v3 }
 0x6e8   :  { %v2109_v51 = vpop.eup %2108 }
 0x6e9   :  { %v2111_v63 = vpop.eup %2110 }
 0x6ea   :  { %v2113_v4 = vpop.eup %2112 }
 0x6eb   :  { %v458_v5 = vadd.f32 1.0, %v2113_v4 }
 0x6ed   :  { %2114 = vrcp.f32 %v458_v5 }
 0x6fa   :  { %v2115_v6 = vpop.eup %2114 }
 0x712   :  { %v516_v52 = vpop.f32.mrf.mxu0 }
 0x713   :  { %v523_v53 = vmul.f32 %v2109_v51, %v516_v52 }
 0x714   :  { %v2001_v54 = vpop.f32.mrf.mxu0 }
 0x715   :  { %v524_v55 = vsub.f32 1.0, %v523_v53  ;;  %v526_v56 = vrot.slane %v523_v53, 2 }
 0x716   :  { %v519_v57 = vpop.f32.mrf.mxu0 }
 0x717   :  { %v528_v58 = vmul.f32 %v526_v56, %v524_v55 }
 0x718   :  { %v2002_v59 = vpop.f32.mrf.mxu0 }
 0x719   :  { %v530_v60 = vrot.slane %v528_v58, 6  ;;  %v546_v61 = vsub.f32 %v524_v55, %v528_v58 }
 0x71b   :  { %542 = vrot.lane.b32.xlu1 %v530_v60, %s2368_s2  ;;  %v548_v62 = vrot.slane %v546_v61, 6  ;;  %v536_v2 = vsub.f32 %v523_v53, %v530_v60 }
 0x71d   :  { %549 = vrot.lane.b32.xlu0 %v548_v62, %s2368_s2 }
 0x71f   :  { %558 = vrot.lane.b32.xlu1 %v2111_v63, %s2375_s28 }
 0x723   :  { %531 = vrot.lane.b32.xlu1 %v530_v60, %s2376_s29 }
 0x727   :  { %538 = vrot.lane.b32.xlu1 %v536_v2, %s2376_s29 }
 0x78d   :  { %v543_v7 = vpop.permute.xlu1 %542 }
 0x78e   :  { %v545_v10 = vmul.f32 %v2115_v6, %v543_v7 }
 0x78f   :  { %v550_v13 = vpop.permute.xlu0 %549 }
 0x790   :  { %v552_v14 = vadd.f32 %v550_v13, %v545_v10 }
 0x791   :  { %v559_v15 = vpop.permute.xlu1 %558 }
 0x792   :  { %v561_v16 = vmul.f32 %v559_v15, %v552_v14 }
 0x794   :  { %563 = vrot.lane.b32.xlu0 %v561_v16, %s2375_s28 }
 0x795   :  { %v532_v17 = vpop.permute.xlu1 %531 }
 0x796   :  { %v534_v19 = vmul.f32 %v2115_v6, %v532_v17 }
 0x799   :  { %v539_v18 = vpop.permute.xlu1 %538 }
 0x79a   :  { %v541_v20 = vadd.f32 %v539_v18, %v534_v19 }
 0x79c   :  { %v556_v24 = vmul.f32 %v554_v21, %v541_v20 }
 0x806   :  { %v564_v26 = vpop.permute.xlu0 %563 }
 0x807   :  { %v2572_v29 = vadd.f32 %v564_v26, %v556_v24 }
 0x809   :  { %2116 = vtanh.f32 %v2572_v29 }
 0x816   :  { %v2117_v30 = vpop.eup %2116 }
 0x817   :  { %569 = vrot.lane.b32.xlu1 %v2117_v30, %s2375_s28 }
 0x889   :  { %v570_v31 = vpop.permute.xlu1 %569 }
 0x88a   :  { %v2576_v32 = vmul.f32 %v2115_v6, %v570_v31 }
 0x88c   :  { %v573_v33 = vpack.c.bf16 %v2576_v32, %v2576_v32 }
 0x88e   :  { %v575_v34 = vrot.slane %v573_v33, 1 }
 0x890   :  { %1935 = vmatmul.mubr.msk.bf16.vlgmr.msra.gmra.mxu1 %vm169_vm0, %v575_v34 }
 0x891   :  { %768 = vmatpush1.bf16.msra.mxu1 %v2488_v9  ;;  %787 = vmatprep.mubr.bf16.mxu1 %v2371_v0 }
 0x892   :  { %769 = vmatprep.subr.bf16.mxu1 %v2490_v11 }
 0x895   :  { %770 = vmatpush1.bf16.msra.mxu1 %v2495_v12 }
 0x896   :  { %943 = vmatprep.subr.bf16.mxu1 %v2486_v8 }
 0x950   :  { %v613_v22 = vpop.f32.mrf.mxu1 }
 0x951   :  { %v622_v54 = vrot.slane %v613_v22, 4  ;;  %v730_v22 = vrot.slane %v2572_v29, 6 }
 0x952   :  { %v615_v35 = vpop.f32.mrf.mxu1 }
 0x953   :  { %v623_v36 = vrot.slane %v615_v35, 4  ;;  %v626_v55 = vadd.f32 %v622_v54, %v2531_v48 }
 0x954   :  { %v617_v37 = vpop.f32.mrf.mxu1 }
 0x955   :  { %v627_v38 = vadd.f32 %v623_v36, %v2511_v27  ;;  %v1936_v14 = vmul.f32 -1.442695, %v626_v55 }
 0x956   :  { %v618_v39 = vpop.f32.mrf.mxu1 }
 0x957   :  { %v638_v41 = vrot.slane %v627_v38, 2  ;;  %v636_v42 = vrot.slane %v627_v38, 4 }
 0x959   :  { %639 = vrot.lane.b32.xlu0 %v638_v41, %s2373_s1 }
 0x9cb   :  { %v640_v43 = vpop.permute.xlu0 %639 }
 0x9cc   :  { %v642_v44 = vsel %vm294_vm1, %v636_v42, %v640_v43  ;;  %v1614_v42 = vsel %vm294_vm1, %v2544_v28, %v2576_v32 }
 0x9cd   :  { %v643_v45 = vsel %vm296_vm2, %v642_v44, -inf }
 0x9ce   :  { %644 = vmax.xlane.f32.xlu1 %v643_v45 }
 0xa57   :  { %v645_v46 = vpop.xlane.xlu1 %644 }
 0xa58   :  { %v646_v47 = vsub.f32 %v642_v44, %v645_v46 }
 0xa5a   :  { %v647_v49 = vmul.f32 1.442695, %v646_v47 }
 0xa5c   :  { %2118 = vpow2.f32 %v647_v49 }
 0xa69   :  { %v2119_v50 = vpop.eup %2118 }
 0xa6a   :  { %v649_v51 = vsel %vm296_vm2, %v2119_v50, 0.0  ;;  %v652_v52 = vpack.c.bf16 %v2119_v50, %v2119_v50 }
 0xa6b   :  { %650 = vadd.xlane.f32.xlu0 %v649_v51 }
 0xa6c   :  { %2006 = vmatmul.mubr.msk.bf16.vlgmr.msra.gmra.mxu0 %vm307_vm5, %v652_v52 }
 0xa6d   :  { %2010 = vmatpush3.bf16.msra.mxu0 %v2519_v40  ;;  %2011 = vmatprep.mubr.msk.bf16.mxu0 %vm2374_vm4, %v2372_v1 }
 0xa6e   :  { %2015 = vmatprep.subr.bf16.mxu0 %v2372_v1 }
 0xaf4   :  { %v651_v53 = vpop.xlane.xlu0 %650 }
 0xaf5   :  { %2120 = vrcp.f32 %v651_v53 }
 0xaf6   :  { %2122 = vtanh.f32 %v626_v55 }
 0xaf7   :  { %2124 = vpow2.f32 %v1936_v14 }
 0xb02   :  { %v2121_v56 = vpop.eup %2120 }
 0xb03   :  { %v2123_v10 = vpop.eup %2122 }
 0xb04   :  { %v2125_v15 = vpop.eup %2124 }
 0xb05   :  { %v631_v16 = vadd.f32 1.0, %v2125_v15 }
 0xb07   :  { %2126 = vrcp.f32 %v631_v16 }
 0xb14   :  { %v2127_v17 = vpop.eup %2126 }
 0xb2c   :  { %v690_v57 = vpop.f32.mrf.mxu0 }
 0xb2d   :  { %v697_v58 = vmul.f32 %v2121_v56, %v690_v57 }
 0xb2e   :  { %v2007_v59 = vpop.f32.mrf.mxu0 }
 0xb2f   :  { %v698_v60 = vsub.f32 1.0, %v697_v58  ;;  %v700_v61 = vrot.slane %v697_v58, 2 }
 0xb30   :  { %v693_v62 = vpop.f32.mrf.mxu0 }
 0xb31   :  { %v702_v63 = vmul.f32 %v700_v61, %v698_v60 }
 0xb32   :  { %v2008_v2 = vpop.f32.mrf.mxu0 }
 0xb33   :  { %v704_v3 = vrot.slane %v702_v63, 4  ;;  %v722_v4 = vsub.f32 %v698_v60, %v702_v63  ;;  %v709_v6 = vrot.slane %v702_v63, 6 }
 0xb35   :  { %718 = vrot.lane.b32.xlu0 %v704_v3, %s2368_s2  ;;  %v724_v5 = vrot.slane %v722_v4, 4  ;;  %v711_v7 = vsub.f32 %v697_v58, %v709_v6 }
 0xb37   :  { %725 = vrot.lane.b32.xlu1 %v724_v5, %s2368_s2  ;;  %v713_v13 = vrot.slane %v711_v7, 6 }
 0xb39   :  { %705 = vrot.lane.b32.xlu0 %v704_v3, %s2376_s29 }
 0xb3b   :  { %734 = vrot.lane.b32.xlu1 %v2123_v10, %s2375_s28 }
 0xb3f   :  { %714 = vrot.lane.b32.xlu1 %v713_v13, %s2376_s29 }
 0xba7   :  { %v719_v18 = vpop.permute.xlu0 %718 }
 0xba8   :  { %v721_v19 = vmul.f32 %v2127_v17, %v719_v18 }
 0xba9   :  { %v726_v20 = vpop.permute.xlu1 %725 }
 0xbaa   :  { %v728_v21 = vadd.f32 %v726_v20, %v721_v19 }
 0xbab   :  { %v706_v30 = vpop.permute.xlu0 %705 }
 0xbac   :  { %v708_v33 = vmul.f32 %v2127_v17, %v706_v30 }
 0xbad   :  { %v735_v24 = vpop.permute.xlu1 %734 }
 0xbae   :  { %v737_v26 = vmul.f32 %v735_v24, %v728_v21 }
 0xbb0   :  { %739 = vrot.lane.b32.xlu0 %v737_v26, %s2375_s28 }
 0xbb1   :  { %v715_v31 = vpop.permute.xlu1 %714 }
 0xbb2   :  { %v717_v34 = vadd.f32 %v715_v31, %v708_v33 }
 0xbb4   :  { %v732_v35 = vmul.f32 %v730_v22, %v717_v34 }
 0xc22   :  { %v740_v36 = vpop.permute.xlu0 %739 }
 0xc23   :  { %v2604_v37 = vadd.f32 %v740_v36, %v732_v35 }
 0xc25   :  { %2128 = vtanh.f32 %v2604_v37 }
 0xc32   :  { %v2129_v38 = vpop.eup %2128 }
 0xc33   :  { %745 = vrot.lane.b32.xlu1 %v2129_v38, %s2375_s28 }
 0xca5   :  { %v746_v39 = vpop.permute.xlu1 %745 }
 0xca6   :  { %v748_v41 = vmul.f32 %v2127_v17, %v746_v39 }
 0xca8   :  { %v749_v43 = vpack.c.bf16 %v748_v41, %v748_v41  ;;  %v2612_v44 = vsel %vm1615_vm6, %v1614_v42, %v748_v41  ;;  %v906_v42 = vrot.slane %v2604_v37, 6 }
 0xcaa   :  { %v751_v29 = vrot.slane %v749_v43, 2 }
 0xcac   :  { %1938 = vmatmul.mubr.msk.bf16.vlgmr.msra.gmra.mxu1 %vm169_vm0, %v751_v29 }
 0xcad   :  { %944 = vmatpush1.bf16.msra.mxu1 %v2488_v9  ;;  %963 = vmatprep.mubr.bf16.mxu1 %v2371_v0 }
 0xcae   :  { %945 = vmatprep.subr.bf16.mxu1 %v2490_v11 }
 0xcb1   :  { %946 = vmatpush1.bf16.msra.mxu1 %v2495_v12 }
 0xcb2   :  { %1107 = vmatprep.subr.bf16.mxu1 %v2486_v8 }
 0xd6c   :  { %v789_v45 = vpop.f32.mrf.mxu1 }
 0xd6d   :  { %v798_v61 = vrot.slane %v789_v45, 2 }
 0xd6e   :  { %v791_v46 = vpop.f32.mrf.mxu1 }
 0xd6f   :  { %v799_v28 = vrot.slane %v791_v46, 2  ;;  %v802_v62 = vadd.f32 %v798_v61, %v2531_v48 }
 0xd70   :  { %v793_v32 = vpop.f32.mrf.mxu1 }
 0xd71   :  { %v803_v47 = vadd.f32 %v799_v28, %v2511_v27  ;;  %v1939_v20 = vmul.f32 -1.442695, %v802_v62 }
 0xd72   :  { %v794_v49 = vpop.f32.mrf.mxu1 }
 0xd73   :  { %v814_v50 = vrot.slane %v803_v47, 4  ;;  %v812_v51 = vrot.slane %v803_v47, 6 }
 0xd75   :  { %815 = vrot.lane.b32.xlu0 %v814_v50, %s2373_s1 }
 0xde7   :  { %v816_v52 = vpop.permute.xlu0 %815 }
 0xde8   :  { %v818_v53 = vsel %vm294_vm1, %v812_v51, %v816_v52 }
 0xde9   :  { %v819_v54 = vsel %vm296_vm2, %v818_v53, -inf }
 0xdea   :  { %820 = vmax.xlane.f32.xlu1 %v819_v54 }
 0xe73   :  { %v821_v55 = vpop.xlane.xlu1 %820 }
 0xe74   :  { %v822_v56 = vsub.f32 %v818_v53, %v821_v55 }
 0xe76   :  { %v823_v57 = vmul.f32 1.442695, %v822_v56 }
 0xe78   :  { %2130 = vpow2.f32 %v823_v57 }
 0xe85   :  { %v2131_v58 = vpop.eup %2130 }
 0xe86   :  { %v825_v59 = vsel %vm296_vm2, %v2131_v58, 0.0  ;;  %v828_v60 = vpack.c.bf16 %v2131_v58, %v2131_v58 }
 0xe87   :  { %826 = vadd.xlane.f32.xlu0 %v825_v59 }
 0xe88   :  { %2012 = vmatmul.mubr.msk.bf16.vlgmr.msra.gmra.mxu0 %vm307_vm5, %v828_v60 }
 0xe89   :  { %2016 = vmatpush3.bf16.msra.mxu0 %v2519_v40  ;;  %2017 = vmatprep.mubr.msk.bf16.mxu0 %vm2374_vm4, %v2372_v1 }
 0xe8a   :  { %2021 = vmatprep.subr.bf16.mxu0 %v2372_v1 }
 0xf10   :  { %v827_v27 = vpop.xlane.xlu0 %826 }
 0xf11   :  { %2132 = vrcp.f32 %v827_v27 }
 0xf12   :  { %2134 = vtanh.f32 %v802_v62 }
 0xf13   :  { %2136 = vpow2.f32 %v1939_v20 }
 0xf1e   :  { %v2133_v63 = vpop.eup %2132 }
 0xf1f   :  { %v2135_v18 = vpop.eup %2134 }
 0xf20   :  { %v2137_v21 = vpop.eup %2136 }
 0xf21   :  { %v807_v24 = vadd.f32 1.0, %v2137_v21 }
 0xf23   :  { %2138 = vrcp.f32 %v807_v24 }
 0xf30   :  { %v2139_v26 = vpop.eup %2138 }
 0xf48   :  { %v866_v2 = vpop.f32.mrf.mxu0 }
 0xf49   :  { %v873_v3 = vmul.f32 %v2133_v63, %v866_v2 }
 0xf4a   :  { %v2013_v4 = vpop.f32.mrf.mxu0 }
 0xf4b   :  { %v874_v5 = vsub.f32 1.0, %v873_v3  ;;  %v876_v6 = vrot.slane %v873_v3, 2 }
 0xf4c   :  { %v869_v7 = vpop.f32.mrf.mxu0 }
 0xf4d   :  { %v878_v10 = vmul.f32 %v876_v6, %v874_v5 }
 0xf4e   :  { %v2014_v13 = vpop.f32.mrf.mxu0 }
 0xf4f   :  { %v880_v14 = vrot.slane %v878_v10, 2  ;;  %v898_v15 = vsub.f32 %v874_v5, %v878_v10  ;;  %v885_v17 = vrot.slane %v878_v10, 6 }
 0xf51   :  { %894 = vrot.lane.b32.xlu0 %v880_v14, %s2368_s2  ;;  %v900_v16 = vrot.slane %v898_v15, 2  ;;  %v887_v48 = vsub.f32 %v873_v3, %v885_v17 }
 0xf53   :  { %901 = vrot.lane.b32.xlu1 %v900_v16, %s2368_s2  ;;  %v889_v19 = vrot.slane %v887_v48, 4 }
 0xf55   :  { %881 = vrot.lane.b32.xlu0 %v880_v14, %s2376_s29 }
 0xf57   :  { %910 = vrot.lane.b32.xlu1 %v2135_v18, %s2375_s28 }
 0xf5b   :  { %890 = vrot.lane.b32.xlu1 %v889_v19, %s2376_s29 }
 0xfc3   :  { %v895_v30 = vpop.permute.xlu0 %894 }
 0xfc4   :  { %v897_v31 = vmul.f32 %v2139_v26, %v895_v30 }
 0xfc5   :  { %v902_v33 = vpop.permute.xlu1 %901 }
 0xfc6   :  { %v904_v34 = vadd.f32 %v902_v33, %v897_v31 }
 0xfc7   :  { %v882_v36 = vpop.permute.xlu0 %881 }
 0xfc8   :  { %v884_v39 = vmul.f32 %v2139_v26, %v882_v36 }
 0xfc9   :  { %v911_v22 = vpop.permute.xlu1 %910 }
 0xfca   :  { %v913_v35 = vmul.f32 %v911_v22, %v904_v34 }
 0xfcc   :  { %915 = vrot.lane.b32.xlu0 %v913_v35, %s2375_s28 }
 0xfcd   :  { %v891_v38 = vpop.permute.xlu1 %890 }
 0xfce   :  { %v893_v41 = vadd.f32 %v891_v38, %v884_v39 }
 0xfd0   :  { %v908_v43 = vmul.f32 %v906_v42, %v893_v41 }
0x103e   :  { %v916_v29 = vpop.permute.xlu0 %915 }
0x103f   :  { %v2638_v45 = vadd.f32 %v916_v29, %v908_v43 }
0x1041   :  { %2140 = vtanh.f32 %v2638_v45  ;;  %v1072_v42 = vrot.slane %v2638_v45, 6 }
0x104e   :  { %v2141_v46 = vpop.eup %2140 }
0x104f   :  { %921 = vrot.lane.b32.xlu1 %v2141_v46, %s2375_s28 }
0x10c1   :  { %v922_v28 = vpop.permute.xlu1 %921 }
0x10c2   :  { %v924_v32 = vmul.f32 %v2139_v26, %v922_v28 }
0x10c4   :  { %v925_v47 = vpack.c.bf16 %v924_v32, %v924_v32  ;;  %v2644_v49 = vsel %vm1617_vm7, %v2612_v44, %v924_v32 }
0x10c6   :  { %v927_v50 = vrot.slane %v925_v47, 3 }
0x10c8   :  { %1941 = vmatmul.mubr.msk.bf16.vlgmr.msra.gmra.mxu1 %vm169_vm0, %v927_v50 }
0x10c9   :  { %1108 = vmatpush1.bf16.msra.mxu1 %v2488_v9  ;;  %1127 = vmatprep.mubr.bf16.mxu1 %v2371_v0 }
0x10ca   :  { %1109 = vmatprep.subr.bf16.mxu1 %v2490_v11 }
0x10cd   :  { %1110 = vmatpush1.bf16.msra.mxu1 %v2495_v12 }
0x10ce   :  { %1280 = vmatprep.subr.bf16.mxu1 %v2486_v8 }
0x1188   :  { %v965_v37 = vpop.f32.mrf.mxu1 }
0x1189   :  { %v972_v2 = vadd.f32 %v965_v37, %v2507_v23 }
0x118a   :  { %v967_v51 = vpop.f32.mrf.mxu1 }
0x118b   :  { %v973_v52 = vadd.f32 %v967_v51, %v2509_v25  ;;  %v1942_v20 = vmul.f32 -1.442695, %v972_v2 }
0x118c   :  { %v969_v53 = vpop.f32.mrf.mxu1 }
0x118d   :  { %v982_v44 = vrot.slane %v973_v52, 6 }
0x118e   :  { %v970_v54 = vpop.f32.mrf.mxu1 }
0x118f   :  { %983 = vrot.lane.b32.xlu0 %v982_v44, %s2373_s1 }
0x1201   :  { %v984_v55 = vpop.permute.xlu0 %983 }
0x1202   :  { %v986_v56 = vsel %vm294_vm1, %v973_v52, %v984_v55 }
0x1203   :  { %v987_v57 = vsel %vm296_vm2, %v986_v56, -inf }
0x1204   :  { %988 = vmax.xlane.f32.xlu1 %v987_v57 }
0x128d   :  { %v989_v58 = vpop.xlane.xlu1 %988 }
0x128e   :  { %v990_v59 = vsub.f32 %v986_v56, %v989_v58 }
0x1290   :  { %v991_v60 = vmul.f32 1.442695, %v990_v59 }
0x1292   :  { %2142 = vpow2.f32 %v991_v60 }
0x129f   :  { %v2143_v27 = vpop.eup %2142 }
0x12a0   :  { %v993_v61 = vsel %vm296_vm2, %v2143_v27, 0.0  ;;  %v996_v62 = vpack.c.bf16 %v2143_v27, %v2143_v27 }
0x12a1   :  { %994 = vadd.xlane.f32.xlu0 %v993_v61 }
0x12a2   :  { %2018 = vmatmul.mubr.msk.bf16.vlgmr.msra.gmra.mxu0 %vm307_vm5, %v996_v62 }
0x12a3   :  { %2022 = vmatpush3.bf16.msra.mxu0 %v2519_v40  ;;  %2023 = vmatprep.mubr.msk.bf16.mxu0 %vm2374_vm4, %v2372_v1 }
0x12a4   :  { %2027 = vmatprep.subr.bf16.mxu0 %v2372_v1 }
0x132a   :  { %v995_v63 = vpop.xlane.xlu0 %994 }
0x132b   :  { %2144 = vrcp.f32 %v995_v63 }
0x132c   :  { %2146 = vtanh.f32 %v972_v2 }
0x132d   :  { %2148 = vpow2.f32 %v1942_v20 }
0x1338   :  { %v2145_v3 = vpop.eup %2144 }
0x1339   :  { %v2147_v18 = vpop.eup %2146 }
0x133a   :  { %v2149_v21 = vpop.eup %2148 }
0x133b   :  { %v977_v24 = vadd.f32 1.0, %v2149_v21 }
0x133d   :  { %2150 = vrcp.f32 %v977_v24 }
0x134a   :  { %v2151_v26 = vpop.eup %2150 }
0x1362   :  { %v1034_v4 = vpop.f32.mrf.mxu0 }
0x1363   :  { %v1041_v5 = vmul.f32 %v2145_v3, %v1034_v4 }
0x1364   :  { %v2019_v6 = vpop.f32.mrf.mxu0 }
0x1365   :  { %v1042_v7 = vsub.f32 1.0, %v1041_v5  ;;  %v1044_v10 = vrot.slane %v1041_v5, 2 }
0x1366   :  { %v1037_v13 = vpop.f32.mrf.mxu0 }
0x1367   :  { %v1046_v14 = vmul.f32 %v1044_v10, %v1042_v7 }
0x1368   :  { %v2020_v15 = vpop.f32.mrf.mxu0 }
0x1369   :  { %1061 = vrot.lane.b32.xlu0 %v1046_v14, %s2368_s2  ;;  %v1065_v16 = vsub.f32 %v1042_v7, %v1046_v14  ;;  %v1052_v17 = vrot.slane %v1046_v14, 6 }
0x136b   :  { %1067 = vrot.lane.b32.xlu1 %v1065_v16, %s2368_s2  ;;  %v1054_v48 = vsub.f32 %v1041_v5, %v1052_v17 }
0x136d   :  { %1048 = vrot.lane.b32.xlu0 %v1046_v14, %s2376_s29  ;;  %v1056_v19 = vrot.slane %v1054_v48, 2 }
0x136f   :  { %1076 = vrot.lane.b32.xlu1 %v2147_v18, %s2375_s28 }
0x1373   :  { %1057 = vrot.lane.b32.xlu1 %v1056_v19, %s2376_s29 }
0x13db   :  { %v1062_v30 = vpop.permute.xlu0 %1061 }
0x13dc   :  { %v1064_v31 = vmul.f32 %v2151_v26, %v1062_v30 }
0x13dd   :  { %v1068_v33 = vpop.permute.xlu1 %1067 }
0x13de   :  { %v1070_v34 = vadd.f32 %v1068_v33, %v1064_v31 }
0x13df   :  { %v1049_v36 = vpop.permute.xlu0 %1048 }
0x13e0   :  { %v1051_v39 = vmul.f32 %v2151_v26, %v1049_v36 }
0x13e1   :  { %v1077_v22 = vpop.permute.xlu1 %1076 }
0x13e2   :  { %v1079_v35 = vmul.f32 %v1077_v22, %v1070_v34 }
0x13e4   :  { %1081 = vrot.lane.b32.xlu0 %v1079_v35, %s2375_s28 }
0x13e5   :  { %v1058_v38 = vpop.permute.xlu1 %1057 }
0x13e6   :  { %v1060_v41 = vadd.f32 %v1058_v38, %v1051_v39 }
0x13e8   :  { %v1074_v43 = vmul.f32 %v1072_v42, %v1060_v41 }
0x1456   :  { %v1082_v29 = vpop.permute.xlu0 %1081 }
0x1457   :  { %v2670_v46 = vadd.f32 %v1082_v29, %v1074_v43 }
0x1459   :  { %2152 = vtanh.f32 %v2670_v46  ;;  %v1243_v38 = vrot.slane %v2670_v46, 6  ;;  %v2207_v46 = vld [vmem:[#allocation2 + $0x4] ss:$8 sps:$4 sm:$0xff]  }
0x1466   :  { %v2153_v28 = vpop.eup %2152 }
0x1467   :  { %1087 = vrot.lane.b32.xlu1 %v2153_v28, %s2375_s28 }
0x14d9   :  { %v1088_v32 = vpop.permute.xlu1 %1087 }
0x14da   :  { %v2674_v47 = vmul.f32 %v2151_v26, %v1088_v32 }
0x14dc   :  { %v1091_v50 = vpack.c.bf16 %v2674_v47, %v2674_v47 }
0x14de   :  { %1944 = vmatmul.mubr.msk.bf16.vlgmr.msra.gmra.mxu1 %vm169_vm0, %v1091_v50 }
0x14df   :  { %1281 = vmatpush1.bf16.msra.mxu1 %v2488_v9  ;;  %1300 = vmatprep.mubr.bf16.mxu1 %v2371_v0 }
0x14e0   :  { %1282 = vmatprep.subr.bf16.mxu1 %v2490_v11 }
0x14e3   :  { %1283 = vmatpush1.bf16.msra.mxu1 %v2495_v12 }
0x14e4   :  { %1456 = vmatprep.subr.bf16.mxu1 %v2486_v8 }
0x159e   :  { %v1129_v45 = vpop.f32.mrf.mxu1 }
0x159f   :  { %v1138_v27 = vrot.slane %v1129_v45, 6  ;;  %v2206_v45 = vld [vmem:[#allocation2 + $0x10] ss:$8 sps:$4 sm:$0xff]  }
0x15a0   :  { %v1131_v37 = vpop.f32.mrf.mxu1 }
0x15a1   :  { %v1139_v51 = vrot.slane %v1131_v37, 6  ;;  %v1142_v61 = vadd.f32 %v1138_v27, %v2507_v23  ;;  %v2208_v37 = vld [vmem:[#allocation2] ss:$8 sps:$4 sm:$0xff]  }
0x15a2   :  { %v1133_v52 = vpop.f32.mrf.mxu1 }
0x15a3   :  { %v1143_v53 = vadd.f32 %v1139_v51, %v2509_v25  ;;  %v1945_v48 = vmul.f32 -1.442695, %v1142_v61 }
0x15a4   :  { %v1134_v44 = vpop.f32.mrf.mxu1 }
0x15a5   :  { %1154 = vrot.lane.b32.xlu0 %v1143_v53, %s2373_s1  ;;  %v1152_v54 = vrot.slane %v1143_v53, 2 }
0x1617   :  { %v1155_v55 = vpop.permute.xlu0 %1154 }
0x1618   :  { %v1157_v9 = vsel %vm294_vm1, %v1152_v54, %v1155_v55 }
0x1619   :  { %v1158_v56 = vsel %vm296_vm2, %v1157_v9, -inf }
0x161a   :  { %1159 = vmax.xlane.f32.xlu1 %v1158_v56 }
0x16a3   :  { %v1160_v11 = vpop.xlane.xlu1 %1159 }
0x16a4   :  { %v1161_v12 = vsub.f32 %v1157_v9, %v1160_v11 }
0x16a6   :  { %v1162_v57 = vmul.f32 1.442695, %v1161_v12 }
0x16a8   :  { %2154 = vpow2.f32 %v1162_v57 }
0x16b5   :  { %v2155_v8 = vpop.eup %2154 }
0x16b6   :  { %v1164_v58 = vsel %vm296_vm2, %v2155_v8, 0.0  ;;  %v1167_v59 = vpack.c.bf16 %v2155_v8, %v2155_v8 }
0x16b7   :  { %1165 = vadd.xlane.f32.xlu0 %v1164_v58 }
0x16b8   :  { %2024 = vmatmul.mubr.msk.bf16.vlgmr.msra.gmra.mxu0 %vm307_vm5, %v1167_v59 }
0x16b9   :  { %2028 = vmatpush3.bf16.msra.mxu0 %v2519_v40  ;;  %2029 = vmatprep.mubr.msk.bf16.mxu0 %vm2374_vm4, %v2372_v1 }
0x16ba   :  { %2033 = vmatprep.subr.bf16.mxu0 %v2372_v1 }
0x1740   :  { %v1166_v60 = vpop.xlane.xlu0 %1165 }
0x1741   :  { %2156 = vrcp.f32 %v1166_v60 }
0x1742   :  { %2158 = vtanh.f32 %v1142_v61 }
0x1743   :  { %2160 = vpow2.f32 %v1945_v48 }
0x174e   :  { %v2157_v62 = vpop.eup %2156 }
0x174f   :  { %v2159_v16 = vpop.eup %2158 }
0x1750   :  { %v2161_v18 = vpop.eup %2160 }
0x1751   :  { %v1147_v19 = vadd.f32 1.0, %v2161_v18 }
0x1753   :  { %2162 = vrcp.f32 %v1147_v19 }
0x1760   :  { %v2163_v20 = vpop.eup %2162 }
0x1778   :  { %v1205_v63 = vpop.f32.mrf.mxu0 }
0x1779   :  { %v1212_v2 = vmul.f32 %v2157_v62, %v1205_v63 }
0x177a   :  { %v2025_v3 = vpop.f32.mrf.mxu0 }
0x177b   :  { %v1213_v4 = vsub.f32 1.0, %v1212_v2  ;;  %v1215_v5 = vrot.slane %v1212_v2, 2 }
0x177c   :  { %v1208_v6 = vpop.f32.mrf.mxu0 }
0x177d   :  { %v1217_v7 = vmul.f32 %v1215_v5, %v1213_v4 }
0x177e   :  { %v2026_v10 = vpop.f32.mrf.mxu0 }
0x177f   :  { %v1219_v13 = vrot.slane %v1217_v7, 6  ;;  %v1235_v14 = vsub.f32 %v1213_v4, %v1217_v7 }
0x1781   :  { %1231 = vrot.lane.b32.xlu0 %v1219_v13, %s2368_s2  ;;  %v1237_v15 = vrot.slane %v1235_v14, 6  ;;  %v1225_v17 = vsub.f32 %v1212_v2, %v1219_v13 }
0x1783   :  { %1238 = vrot.lane.b32.xlu1 %v1237_v15, %s2368_s2 }
0x1785   :  { %1220 = vrot.lane.b32.xlu0 %v1219_v13, %s2376_s29 }
0x1787   :  { %1247 = vrot.lane.b32.xlu1 %v2159_v16, %s2375_s28 }
0x178b   :  { %1227 = vrot.lane.b32.xlu1 %v1225_v17, %s2376_s29 }
0x17f3   :  { %v1232_v21 = vpop.permute.xlu0 %1231 }
0x17f4   :  { %v1234_v24 = vmul.f32 %v2163_v20, %v1232_v21 }
0x17f5   :  { %v1239_v26 = vpop.permute.xlu1 %1238 }
0x17f6   :  { %v1241_v30 = vadd.f32 %v1239_v26, %v1234_v24 }
0x17f7   :  { %v1221_v34 = vpop.permute.xlu0 %1220 }
0x17f8   :  { %v1223_v35 = vmul.f32 %v2163_v20, %v1221_v34 }
0x17f9   :  { %v1248_v31 = vpop.permute.xlu1 %1247 }
0x17fa   :  { %v1250_v33 = vmul.f32 %v1248_v31, %v1241_v30 }
0x17fc   :  { %1252 = vrot.lane.b32.xlu0 %v1250_v33, %s2375_s28 }
0x17fd   :  { %v1228_v22 = vpop.permute.xlu1 %1227 }
0x17fe   :  { %v1230_v36 = vadd.f32 %v1228_v22, %v1223_v35 }
0x1800   :  { %v1245_v39 = vmul.f32 %v1243_v38, %v1230_v36 }
0x186e   :  { %v1253_v41 = vpop.permute.xlu0 %1252 }
0x186f   :  { %v2702_v42 = vadd.f32 %v1253_v41, %v1245_v39 }
0x1871   :  { %2164 = vtanh.f32 %v2702_v42 }
0x187e   :  { %v2165_v43 = vpop.eup %2164 }
0x187f   :  { %1258 = vrot.lane.b32.xlu1 %v2165_v43, %s2375_s28  ;;  %v1419_v43 = vrot.slane %v2702_v42, 6 }
0x18f1   :  { %v1259_v29 = vpop.permute.xlu1 %1258 }
0x18f2   :  { %v2706_v28 = vmul.f32 %v2163_v20, %v1259_v29 }
0x18f4   :  { %v1262_v32 = vpack.c.bf16 %v2706_v28, %v2706_v28 }
0x18f6   :  { %v1264_v50 = vrot.slane %v1262_v32, 1 }
0x18f8   :  { %1947 = vmatmul.mubr.msk.bf16.vlgmr.msra.gmra.mxu1 %vm169_vm0, %v1264_v50 }
0x18f9   :  { %1457 = vmatpush1.bf16.msra.mxu1 %v2206_v45  ;;  %1476 = vmatprep.mubr.bf16.mxu1 %v2371_v0 }
0x18fa   :  { %1458 = vmatprep.subr.bf16.mxu1 %v2207_v46 }
0x18fd   :  { %1459 = vmatpush1.bf16.msra.mxu1 %v2208_v37 }
0x18fe   :  { %2039 = vmatprep.subr.bf16.mxu1 %v2372_v1 }
0x19b8   :  { %v1302_v51 = vpop.f32.mrf.mxu1 }
0x19b9   :  { %v1311_v62 = vrot.slane %v1302_v51, 4  ;;  %v1619_v51 = vsel %vm294_vm1, %v2674_v47, %v2706_v28 }
0x19ba   :  { %v1304_v52 = vpop.f32.mrf.mxu1 }
0x19bb   :  { %v1312_v53 = vrot.slane %v1304_v52, 4  ;;  %v1315_v63 = vadd.f32 %v1311_v62, %v2507_v23 }
0x19bc   :  { %v1306_v44 = vpop.f32.mrf.mxu1 }
0x19bd   :  { %v1316_v54 = vadd.f32 %v1312_v53, %v2509_v25  ;;  %v1948_v20 = vmul.f32 -1.442695, %v1315_v63 }
0x19be   :  { %v1307_v55 = vpop.f32.mrf.mxu1 }
0x19bf   :  { %v1327_v9 = vrot.slane %v1316_v54, 2  ;;  %v1325_v56 = vrot.slane %v1316_v54, 4 }
0x19c1   :  { %1328 = vrot.lane.b32.xlu0 %v1327_v9, %s2373_s1 }
0x1a33   :  { %v1329_v11 = vpop.permute.xlu0 %1328 }
0x1a34   :  { %v1331_v0 = vsel %vm294_vm1, %v1325_v56, %v1329_v11 }
0x1a35   :  { %v1332_v12 = vsel %vm296_vm2, %v1331_v0, -inf }
0x1a36   :  { %1333 = vmax.xlane.f32.xlu1 %v1332_v12 }
0x1abf   :  { %v1334_v57 = vpop.xlane.xlu1 %1333 }
0x1ac0   :  { %v1335_v8 = vsub.f32 %v1331_v0, %v1334_v57 }
0x1ac2   :  { %v1336_v58 = vmul.f32 1.442695, %v1335_v8 }
0x1ac4   :  { %2166 = vpow2.f32 %v1336_v58 }
0x1ad1   :  { %v2167_v59 = vpop.eup %2166 }
0x1ad2   :  { %v1338_v60 = vsel %vm296_vm2, %v2167_v59, 0.0  ;;  %v1341_v27 = vpack.c.bf16 %v2167_v59, %v2167_v59 }
0x1ad3   :  { %1339 = vadd.xlane.f32.xlu0 %v1338_v60 }
0x1ad4   :  { %2030 = vmatmul.mubr.msk.bf16.vlgmr.msra.gmra.mxu0 %vm307_vm5, %v1341_v27 }
0x1ad5   :  { %2034 = vmatpush3.bf16.msra.mxu0 %v2519_v40  ;;  %2035 = vmatprep.mubr.msk.bf16.mxu0 %vm2374_vm4, %v2372_v1 }
0x1ad6   :  { %2047 = vmatprep.subr.bf16.mxu0 %v2372_v1 }
0x1b5c   :  { %v1340_v61 = vpop.xlane.xlu0 %1339 }
0x1b5d   :  { %2168 = vrcp.f32 %v1340_v61 }
0x1b5e   :  { %2170 = vtanh.f32 %v1315_v63 }
0x1b5f   :  { %2172 = vpow2.f32 %v1948_v20 }
0x1b6a   :  { %v2169_v2 = vpop.eup %2168 }
0x1b6b   :  { %v2171_v18 = vpop.eup %2170 }
0x1b6c   :  { %v2173_v21 = vpop.eup %2172 }
0x1b6d   :  { %v1320_v24 = vadd.f32 1.0, %v2173_v21 }
0x1b6f   :  { %2174 = vrcp.f32 %v1320_v24 }
0x1b7c   :  { %v2175_v26 = vpop.eup %2174 }
0x1b94   :  { %v1379_v3 = vpop.f32.mrf.mxu0 }
0x1b95   :  { %v1386_v4 = vmul.f32 %v2169_v2, %v1379_v3 }
0x1b96   :  { %v2031_v5 = vpop.f32.mrf.mxu0 }
0x1b97   :  { %v1387_v6 = vsub.f32 1.0, %v1386_v4  ;;  %v1389_v7 = vrot.slane %v1386_v4, 2 }
0x1b98   :  { %v1382_v10 = vpop.f32.mrf.mxu0 }
0x1b99   :  { %v1391_v13 = vmul.f32 %v1389_v7, %v1387_v6 }
0x1b9a   :  { %v2032_v40 = vpop.f32.mrf.mxu0 }
0x1b9b   :  { %v1393_v14 = vrot.slane %v1391_v13, 4  ;;  %v1411_v15 = vsub.f32 %v1387_v6, %v1391_v13  ;;  %v1398_v17 = vrot.slane %v1391_v13, 6 }
0x1b9d   :  { %1407 = vrot.lane.b32.xlu0 %v1393_v14, %s2368_s2  ;;  %v1413_v16 = vrot.slane %v1411_v15, 4  ;;  %v1400_v48 = vsub.f32 %v1386_v4, %v1398_v17 }
0x1b9f   :  { %1414 = vrot.lane.b32.xlu1 %v1413_v16, %s2368_s2  ;;  %v1402_v19 = vrot.slane %v1400_v48, 6 }
0x1ba1   :  { %1394 = vrot.lane.b32.xlu0 %v1393_v14, %s2376_s29 }
0x1ba3   :  { %1423 = vrot.lane.b32.xlu1 %v2171_v18, %s2375_s28 }
0x1ba7   :  { %1403 = vrot.lane.b32.xlu1 %v1402_v19, %s2376_s29 }
0x1c0f   :  { %v1408_v30 = vpop.permute.xlu0 %1407 }
0x1c10   :  { %v1410_v31 = vmul.f32 %v2175_v26, %v1408_v30 }
0x1c11   :  { %v1415_v33 = vpop.permute.xlu1 %1414 }
0x1c12   :  { %v1417_v34 = vadd.f32 %v1415_v33, %v1410_v31 }
0x1c13   :  { %v1395_v36 = vpop.permute.xlu0 %1394 }
0x1c14   :  { %v1397_v39 = vmul.f32 %v2175_v26, %v1395_v36 }
0x1c15   :  { %v1424_v22 = vpop.permute.xlu1 %1423 }
0x1c16   :  { %v1426_v35 = vmul.f32 %v1424_v22, %v1417_v34 }
0x1c18   :  { %1428 = vrot.lane.b32.xlu0 %v1426_v35, %s2375_s28  ;;  %v2209_v35 = vld [vmem:[%s2812_s0] sm:$0xff] }
0x1c19   :  { %v1404_v38 = vpop.permute.xlu1 %1403  ;;  %v1622_v36 = vadd.f32 %v2209_v35, %v2644_v49 }
0x1c1a   :  { %v1406_v41 = vadd.f32 %v1404_v38, %v1397_v39 }
0x1c1b   :  { %v1626_v38 = vsel %vm169_vm0, %v1622_v36, 0.0 }
0x1c1c   :  { %v1421_v29 = vmul.f32 %v1419_v43, %v1406_v41 }
0x1c8a   :  { %v1429_v32 = vpop.permute.xlu0 %1428 }
0x1c8b   :  { %v2731_v50 = vadd.f32 %v1429_v32, %v1421_v29 }
0x1c8d   :  { %2176 = vtanh.f32 %v2731_v50  ;;  %v1595_v32 = vrot.slane %v2731_v50, 6  ;;  %v2210_v50 = vld [vmem:[%s2812_s0 + $0x8] sm:$0xff] }
0x1c9a   :  { %v2177_v45 = vpop.eup %2176 }
0x1c9b   :  { %1434 = vrot.lane.b32.xlu1 %v2177_v45, %s2375_s28 }
0x1d0d   :  { %v1435_v46 = vpop.permute.xlu1 %1434 }
0x1d0e   :  { %v1437_v37 = vmul.f32 %v2175_v26, %v1435_v46 }
0x1d10   :  { %v1438_v52 = vpack.c.bf16 %v1437_v37, %v1437_v37  ;;  %v2739_v53 = vsel %vm1615_vm6, %v1619_v51, %v1437_v37 }
0x1d12   :  { %v1440_v42 = vrot.slane %v1438_v52, 2 }
0x1d14   :  { %1950 = vmatmul.mubr.msk.bf16.vlgmr.msra.gmra.mxu1 %vm169_vm0, %v1440_v42 }
0x1d15   :  { %2043 = vmatprep.mubr.msk.bf16.mxu1 %vm2374_vm4, %v2372_v1 }
0x1dd4   :  { %v1478_v44 = vpop.f32.mrf.mxu1 }
0x1dd5   :  { %v1487_v62 = vrot.slane %v1478_v44, 2 }
0x1dd6   :  { %v1480_v54 = vpop.f32.mrf.mxu1 }
0x1dd7   :  { %v1488_v55 = vrot.slane %v1480_v54, 2  ;;  %v1491_v63 = vadd.f32 %v1487_v62, %v2507_v23 }
0x1dd8   :  { %v1482_v9 = vpop.f32.mrf.mxu1 }
0x1dd9   :  { %v1492_v56 = vadd.f32 %v1488_v55, %v2509_v25  ;;  %v1951_v19 = vmul.f32 -1.442695, %v1491_v63 }
0x1dda   :  { %v1483_v11 = vpop.f32.mrf.mxu1 }
0x1ddb   :  { %v1503_v0 = vrot.slane %v1492_v56, 4  ;;  %v1501_v47 = vrot.slane %v1492_v56, 6 }
0x1ddd   :  { %1504 = vrot.lane.b32.xlu0 %v1503_v0, %s2373_s1 }
0x1e4f   :  { %v1505_v28 = vpop.permute.xlu0 %1504 }
0x1e50   :  { %v1507_v12 = vsel %vm294_vm1, %v1501_v47, %v1505_v28 }
0x1e51   :  { %v1508_v57 = vsel %vm296_vm2, %v1507_v12, -inf }
0x1e52   :  { %1509 = vmax.xlane.f32.xlu1 %v1508_v57 }
0x1edb   :  { %v1510_v8 = vpop.xlane.xlu1 %1509 }
0x1edc   :  { %v1511_v58 = vsub.f32 %v1507_v12, %v1510_v8 }
0x1ede   :  { %v1512_v59 = vmul.f32 1.442695, %v1511_v58  ;;  %v2088_v58 = vld [vmem:[#allocation10 + $0x8] sm:$0xff]  }
0x1edf   :  { %2040 = vmatpush3.bf16.msra.mxu1 %v2088_v58 }
0x1ee0   :  { %2178 = vpow2.f32 %v1512_v59  ;;  %v2089_v59 = vld [vmem:[#allocation10] sm:$0xff]   ;;  %2041 = vmatprep.subr.bf16.mxu1 %v2372_v1 }
0x1ee3   :  { %2042 = vmatpush3.bf16.msra.mxu1 %v2089_v59 }
0x1eed   :  { %v2179_v60 = vpop.eup %2178 }
0x1eee   :  { %v1514_v27 = vsel %vm296_vm2, %v2179_v60, 0.0  ;;  %v1517_v61 = vpack.c.bf16 %v2179_v60, %v2179_v60 }
0x1eef   :  { %1515 = vadd.xlane.f32.xlu0 %v1514_v27 }
0x1ef0   :  { %2036 = vmatmul.mubr.msk.bf16.vlgmr.msra.gmra.mxu0 %vm307_vm5, %v1517_v61 }
0x1ef1   :  { %2055 = vmatprep.mubr.msk.bf16.mxu0 %vm2374_vm4, %v2372_v1 }
0x1f78   :  { %v1516_v25 = vpop.xlane.xlu0 %1515 }
0x1f79   :  { %2180 = vrcp.f32 %v1516_v25 }
0x1f7a   :  { %2182 = vtanh.f32 %v1491_v63 }
0x1f7b   :  { %2184 = vpow2.f32 %v1951_v19  ;;  %v1954_v19 = vld [vmem:[#allocation8] ss:$0 sm:$0xff] }
0x1f86   :  { %v2181_v2 = vpop.eup %2180 }
0x1f87   :  { %v2183_v48 = vpop.eup %2182 }
0x1f88   :  { %v2185_v20 = vpop.eup %2184 }
0x1f89   :  { %v1496_v21 = vadd.f32 1.0, %v2185_v20 }
0x1f8b   :  { %2186 = vrcp.f32 %v1496_v21 }
0x1f98   :  { %v2187_v24 = vpop.eup %2186 }
0x1fb0   :  { %v1555_v3 = vpop.f32.mrf.mxu0 }
0x1fb1   :  { %v1562_v4 = vmul.f32 %v2181_v2, %v1555_v3 }
0x1fb2   :  { %v2037_v5 = vpop.f32.mrf.mxu0 }
0x1fb3   :  { %v1563_v6 = vsub.f32 1.0, %v1562_v4  ;;  %v1565_v7 = vrot.slane %v1562_v4, 2 }
0x1fb4   :  { %v1558_v10 = vpop.f32.mrf.mxu0 }
0x1fb5   :  { %v1567_v13 = vmul.f32 %v1565_v7, %v1563_v6 }
0x1fb6   :  { %v2038_v40 = vpop.f32.mrf.mxu0 }
0x1fb7   :  { %v1569_v14 = vrot.slane %v1567_v13, 2  ;;  %v1587_v15 = vsub.f32 %v1563_v6, %v1567_v13  ;;  %v1574_v17 = vrot.slane %v1567_v13, 6 }
0x1fb9   :  { %1583 = vrot.lane.b32.xlu0 %v1569_v14, %s2368_s2  ;;  %v1589_v16 = vrot.slane %v1587_v15, 2  ;;  %v1576_v23 = vsub.f32 %v1562_v4, %v1574_v17  ;;  %v1953_v15 = vld [vmem:[#allocation7] ss:$0 sm:$0xff] }
0x1fbb   :  { %1590 = vrot.lane.b32.xlu1 %v1589_v16, %s2368_s2  ;;  %v1578_v18 = vrot.slane %v1576_v23, 4 }
0x1fbd   :  { %1570 = vrot.lane.b32.xlu0 %v1569_v14, %s2376_s29 }
0x1fbf   :  { %1599 = vrot.lane.b32.xlu1 %v2183_v48, %s2375_s28 }
0x1fc3   :  { %1579 = vrot.lane.b32.xlu1 %v1578_v18, %s2376_s29 }
0x202b   :  { %v1584_v26 = vpop.permute.xlu0 %1583 }
0x202c   :  { %v1586_v30 = vmul.f32 %v2187_v24, %v1584_v26 }
0x202d   :  { %v1591_v31 = vpop.permute.xlu1 %1590 }
0x202e   :  { %v1593_v33 = vadd.f32 %v1591_v31, %v1586_v30  ;;  %v2091_v30 = vld [vmem:[%s2820_s8 + $0x10] sm:$0xff]   ;;  %v2092_v31 = vld [vmem:[%s2820_s8 + $0x8] sm:$0xff]  }
0x202f   :  { %v1571_v39 = vpop.permute.xlu0 %1570 }
0x2030   :  { %v1573_v43 = vmul.f32 %v2187_v24, %v1571_v39 }
0x2031   :  { %v1600_v34 = vpop.permute.xlu1 %1599 }
0x2032   :  { %v1602_v22 = vmul.f32 %v1600_v34, %v1593_v33  ;;  %v2093_v33 = vld [vmem:[%s2820_s8] sm:$0xff]   ;;  %v1955_v34 = vld [vmem:[#allocation11] ss:$0 sm:$0xff] }
0x2034   :  { %1604 = vrot.lane.b32.xlu0 %v1602_v22, %s2375_s28 }
0x2035   :  { %v1580_v41 = vpop.permute.xlu1 %1579 }
0x2036   :  { %v1582_v29 = vadd.f32 %v1580_v41, %v1573_v43 }
0x2038   :  { %v1597_v45 = vmul.f32 %v1595_v32, %v1582_v29 }
0x2053   :  { %1627 = vadd.xlane.f32.xlu0 %v1626_v38 }
0x20a6   :  { %v1605_v46 = vpop.permute.xlu0 %1604 }
0x20a7   :  { %v1607_v37 = vadd.f32 %v1605_v46, %v1597_v45 }
0x20a9   :  { %2188 = vtanh.f32 %v1607_v37 }
0x20b6   :  { %v2189_v51 = vpop.eup %2188 }
0x20b7   :  { %1610 = vrot.lane.b32.xlu1 %v2189_v51, %s2375_s28 }
0x20dc   :  { %v1628_v52 = vpop.xlane.xlu0 %1627 }
0x20dd   :  { %v1633_v42 = vmul.f32 0.03125, %v1628_v52 }
0x20df   :  { %v1635_v44 = vsub.f32 %v1622_v36, %v1633_v42 }
0x20e1   :  { %v1637_v49 = vmul.f32 %v1635_v44, %v1635_v44  ;;  %v1653_v17 = vmul.f32 %v1953_v15, %v1635_v44 }
0x20e3   :  { %v1639_v54 = vsel %vm169_vm0, %v1637_v49, 0.0 }
0x20e4   :  { %1640 = vadd.xlane.f32.xlu0 %v1639_v54 }
0x2129   :  { %v1611_v55 = vpop.permute.xlu1 %1610 }
0x212a   :  { %v1613_v9 = vmul.f32 %v2187_v24, %v1611_v55 }
0x212c   :  { %v1621_v56 = vsel %vm1617_vm7, %v2739_v53, %v1613_v9  ;;  %v2090_v53 = vld [vmem:[%s2820_s8 + $0x18] sm:$0xff]  }
0x212d   :  { %v1623_v11 = vadd.f32 %v2210_v50, %v1621_v56  ;;  %2048 = vmatpush3.bf16.msra.mxu0 %v2090_v53 }
0x212e   :  { %2049 = vmatprep.subr.bf16.mxu0 %v2372_v1 }
0x212f   :  { %v1629_v0 = vsel %vm169_vm0, %v1623_v11, 0.0 }
0x2130   :  { %1630 = vadd.xlane.f32.xlu1 %v1629_v0 }
0x2131   :  { %2050 = vmatpush3.bf16.msra.mxu0 %v2091_v30 }
0x2132   :  { %2051 = vmatprep.subr.bf16.mxu0 %v2372_v1 }
0x2135   :  { %2052 = vmatpush3.bf16.msra.mxu0 %v2092_v31 }
0x2136   :  { %2053 = vmatprep.subr.bf16.mxu0 %v2372_v1  ;;  %v1959_v1 = vld [vmem:[%s2821_s9] ss:$0 sm:$0xff] }
0x2139   :  { %2054 = vmatpush3.bf16.msra.mxu0 %v2093_v33 }
0x216d   :  { %v1641_v60 = vpop.xlane.xlu0 %1640 }
0x216e   :  { %v1645_v27 = vmul.f32 0.032258064, %v1641_v60 }
0x2170   :  { %2190 = vrsqrt.f32 %v1645_v27  ;;  %vm1657_vm8 = vcmp.eq.f32.partialorder %v1645_v27, inf  ;;  %v1660_v3 = vand.u32 2147483648, %v1645_v27  ;;  %vm1659_vm9 = vcmp.eq.f32.partialorder %v1645_v27, 0.0 }
0x217d   :  { %v2191_v62 = vpop.eup %2190 }
0x217e   :  { %v1656_v63 = vmul.f32 %v2191_v62, %v1645_v27 }
0x2180   :  { %v1658_v2 = vsel %vm1657_vm8, %v1645_v27, %v1656_v63 }
0x2181   :  { %v1661_v4 = vsel %vm1659_vm9, %v1660_v3, %v1658_v2 }
0x2182   :  { %v1669_v5 = vadd.f32 1e-06, %v1661_v4 }
0x21b9   :  { %v1631_v47 = vpop.xlane.xlu1 %1630 }
0x21ba   :  { %v1634_v28 = vmul.f32 0.03125, %v1631_v47 }
0x21bc   :  { %v1636_v12 = vsub.f32 %v1623_v11, %v1634_v28 }
0x21be   :  { %v1638_v57 = vmul.f32 %v1636_v12, %v1636_v12  ;;  %v1654_v23 = vmul.f32 %v1953_v15, %v1636_v12  ;;  %v1966_v15 = vld [vmem:[%s2823_s11] ss:$0 sm:$0xff] }
0x21c0   :  { %v1642_v8 = vsel %vm169_vm0, %v1638_v57, 0.0 }
0x21c1   :  { %1643 = vadd.xlane.f32.xlu0 %v1642_v8 }
0x224a   :  { %v1644_v61 = vpop.xlane.xlu0 %1643 }
0x224b   :  { %v1646_v25 = vmul.f32 0.032258064, %v1644_v61 }
0x224d   :  { %2192 = vrsqrt.f32 %v1646_v25  ;;  %vm1664_vm10 = vcmp.eq.f32.partialorder %v1646_v25, inf  ;;  %v1667_v10 = vand.u32 2147483648, %v1646_v25  ;;  %vm1666_vm11 = vcmp.eq.f32.partialorder %v1646_v25, 0.0 }
0x224e   :  { %2194 = vrcp.f32 %v1669_v5 }
0x225a   :  { %v2193_v6 = vpop.eup %2192 }
0x225b   :  { %v1663_v7 = vmul.f32 %v2193_v6, %v1646_v25  ;;  %v2195_v16 = vpop.eup %2194 }
0x225c   :  { %v1672_v48 = vmul.f32 %v2195_v16, %v1653_v17 }
0x225d   :  { %v1665_v13 = vsel %vm1664_vm10, %v1646_v25, %v1663_v7 }
0x225e   :  { %v1668_v40 = vsel %vm1666_vm11, %v1667_v10, %v1665_v13  ;;  %v1681_v21 = vadd.f32 %v1954_v19, %v1672_v48  ;;  %v1965_v13 = vld [vmem:[%s2822_s10] ss:$0 sm:$0xff]  ;;  %s2331_s10 = scalar_lea.vmem %s1906_s24, 256 }
0x225f   :  { %v1670_v14 = vadd.f32 1e-06, %v1668_v40  ;;  %p2332_p2 = scmp.ne.s32.totalorder %s1906_s24, %s2331_s10  ;;  %p2337_p4 = scmp.lt.s32.totalorder %s2331_s10, %s2331_s10 }
0x2261   :  { %2196 = vrcp.f32 %v1670_v14  ;;  %p2338_p5 = por %p2337_p4, %p2336_p3 }
0x2263   :  { %p2339_p6 = pnand %p2338_p5, %p2332_p2 }
0x226e   :  { %v2197_v18 = vpop.eup %2196 }
0x226f   :  { %v1674_v20 = vmul.f32 %v2197_v18, %v1654_v23 }
0x2271   :  { %v1682_v24 = vadd.f32 %v1954_v19, %v1674_v20 }
0x2273   :  { %v1683_v26 = vpack.c.bf16 %v1682_v24, %v1681_v21 }
0x2275   :  { %2044 = vmatmul.mubr.msk.bf16.vlgmr.msra.gmra.mxu1 %vm169_vm0, %v1683_v26 }
0x2335   :  { %v1744_v22 = vpop.f32.mrf.mxu1 }
0x2336   :  { %v1745_v36 = vadd.f32 %v1955_v34, %v1744_v22 }
0x2337   :  { %v2045_v35 = vpop.f32.mrf.mxu1 }
0x2338   :  { %v1751_v43 = vmax.f32 %v1745_v36, 0.0 }
0x2339   :  { %v1747_v38 = vpop.f32.mrf.mxu1 }
0x233a   :  { %v1748_v39 = vadd.f32 %v1955_v34, %v1747_v38 }
0x233b   :  { %v2046_v41 = vpop.f32.mrf.mxu1 }
0x233c   :  { %v1752_v29 = vmax.f32 %v1748_v39, 0.0 }
0x233e   :  { %v1753_v32 = vpack.c.bf16 %v1752_v29, %v1751_v43 }
0x2340   :  { %2056 = vmatmul.mubr.msk.bf16.vlgmr.msra.gmra.mxu0 %vm1793_vm12, %v1753_v32 }
0x2400   :  { %v1831_v45 = vpop.f32.mrf.mxu0 }
0x2401   :  { %v1832_v46 = vadd.f32 %v1959_v1, %v1831_v45 }
0x2402   :  { %v2057_v37 = vpop.f32.mrf.mxu0 }
0x2403   :  { %v1838_v51 = vadd.f32 %v1832_v46, %v1681_v21 }
0x2404   :  { %v1834_v52 = vpop.f32.mrf.mxu0 }
0x2405   :  { %v1835_v42 = vadd.f32 %v1959_v1, %v1834_v52  ;;  %v1842_v44 = vsel %vm169_vm0, %v1838_v51, 0.0 }
0x2406   :  { %1843 = vadd.xlane.f32.xlu1 %v1842_v44  ;;  %v2058_v49 = vpop.f32.mrf.mxu0 }
0x2407   :  { %v1839_v54 = vadd.f32 %v1835_v42, %v1682_v24 }
0x2409   :  { %v1845_v55 = vsel %vm169_vm0, %v1839_v54, 0.0 }
0x240a   :  { %1846 = vadd.xlane.f32.xlu0 %v1845_v55 }
0x248f   :  { %v1844_v9 = vpop.xlane.xlu1 %1843 }
0x2490   :  { %v1848_v56 = vmul.f32 0.03125, %v1844_v9 }
0x2492   :  { %v1850_v50 = vsub.f32 %v1838_v51, %v1848_v56 }
0x2493   :  { %v1847_v11 = vpop.xlane.xlu0 %1846 }
0x2494   :  { %v1849_v0 = vmul.f32 0.03125, %v1847_v11  ;;  %v1852_v47 = vmul.f32 %v1850_v50, %v1850_v50  ;;  %v1868_v40 = vmul.f32 %v1965_v13, %v1850_v50 }
0x2496   :  { %v1851_v28 = vsub.f32 %v1839_v54, %v1849_v0  ;;  %v1854_v12 = vsel %vm169_vm0, %v1852_v47, 0.0 }
0x2497   :  { %1855 = vadd.xlane.f32.xlu1 %v1854_v12 }
0x2498   :  { %v1853_v57 = vmul.f32 %v1851_v28, %v1851_v28  ;;  %v1869_v17 = vmul.f32 %v1965_v13, %v1851_v28 }
0x249a   :  { %v1857_v8 = vsel %vm169_vm0, %v1853_v57, 0.0 }
0x249b   :  { %1858 = vadd.xlane.f32.xlu0 %v1857_v8 }
0x2520   :  { %v1856_v58 = vpop.xlane.xlu1 %1855 }
0x2521   :  { %v1860_v59 = vmul.f32 0.032258064, %v1856_v58 }
0x2523   :  { %2198 = vrsqrt.f32 %v1860_v59  ;;  %vm1872_vm13 = vcmp.eq.f32.partialorder %v1860_v59, inf  ;;  %v1875_v25 = vand.u32 2147483648, %v1860_v59  ;;  %vm1874_vm14 = vcmp.eq.f32.partialorder %v1860_v59, 0.0 }
0x2524   :  { %v1859_v53 = vpop.xlane.xlu0 %1858 }
0x2525   :  { %v1861_v60 = vmul.f32 0.032258064, %v1859_v53 }
0x2527   :  { %2200 = vrsqrt.f32 %v1861_v60  ;;  %vm1879_vm15 = vcmp.eq.f32.partialorder %v1861_v60, inf  ;;  %v1882_v5 = vand.u32 2147483648, %v1861_v60  ;;  %vm1881_vm1 = vcmp.eq.f32.partialorder %v1861_v60, 0.0 }
0x2530   :  { %v2199_v27 = vpop.eup %2198 }
0x2531   :  { %v1871_v61 = vmul.f32 %v2199_v27, %v1860_v59 }
0x2533   :  { %v1873_v62 = vsel %vm1872_vm13, %v1860_v59, %v1871_v61 }
0x2534   :  { %v2201_v63 = vpop.eup %2200  ;;  %v1876_v2 = vsel %vm1874_vm14, %v1875_v25, %v1873_v62 }
0x2535   :  { %v1884_v3 = vadd.f32 1e-06, %v1876_v2  ;;  %v1878_v4 = vmul.f32 %v2201_v63, %v1861_v60 }
0x2537   :  { %2202 = vrcp.f32 %v1884_v3  ;;  %v1880_v6 = vsel %vm1879_vm15, %v1861_v60, %v1878_v4 }
0x2538   :  { %v1883_v7 = vsel %vm1881_vm1, %v1882_v5, %v1880_v6 }
0x2539   :  { %v1885_v10 = vadd.f32 1e-06, %v1883_v7 }
0x253b   :  { %2204 = vrcp.f32 %v1885_v10 }
0x2544   :  { %v2203_v14 = vpop.eup %2202 }
0x2545   :  { %v1887_v16 = vmul.f32 %v2203_v14, %v1868_v40 }
0x2547   :  { %v1896_v23 = vadd.f32 %v1966_v15, %v1887_v16 }
0x2548   :  { %v2205_v48 = vpop.eup %2204 }
0x2549   :  { %v1889_v18 = vmul.f32 %v2205_v48, %v1869_v17  ;;  %1898 = vst.msk [vmem:[#allocation13] sm:$0xff] %vm169_vm0, %v1896_v23 }
0x254b   :  { %v1897_v19 = vadd.f32 %v1966_v15, %v1889_v18 }
0x254d   :  { %1899 = vst.msk [vmem:[#allocation13 + $0x8] sm:$0xff] %vm169_vm0, %v1897_v19 }
0x254e   :  { %2342 = shalt.err (!%p2339_p6)
}
0x254f   :  { %1911 = dma.vmem_to_hbm [thread:$0]  %s1906_s24, 256, %s2824_s12, [#allocation4], %s2364_s3, %s2364_s3, %s2365_s17  }
0x2550   :  { %2359 = dma.done.wait [#allocation4], 256  }
0x2551   :  { %2360 = vsyncadd [#allocation4], 4294967040 }
0x2552   :  { %1915 = vsyncpa [#allocation3], 1 }
0x2553   :  { %1916 = vsyncpa [#allocation6], 1 }
0x2554   :  { %1917 = vsyncpa [#allocation9], 1 }
0x2555   :  { %1918 = vsyncpa [#allocation12], 1 }
0x2556   :  { %1919 = vsyncpa [#allocation4], 1 }

</bundles_post_ra>
